<compile_context>
chip_gen: v7x
topology: tpu7x:2x2x1
jax: 0.10.0
libtpu: 0.0.40
codegen_flags: <defaults>
</compile_context>

<pallas_src>
import functools
import math

import jax
import jax.numpy as jnp
from jax import lax
from jax.experimental import pallas as pl
from jax.experimental.pallas import tpu as pltpu

# ---------------- tiny-BERT config ----------------
BATCH = 2
SEQ = 8
VOCAB = 100
MAX_POS = 16
TYPE_VOCAB = 2
HIDDEN = 32
NUM_HEADS = 2
HEAD_DIM = HIDDEN // NUM_HEADS
INTER = 64
LAYERS = 2
NUM_CLASSES = 4
LN_EPS = 1e-12

# Lane-aligned offsets inside each per-layer weight plane (every weight starts
# on a 128-lane boundary so static slices never straddle a tile origin).
W_QKV_OFF = 0        # (HIDDEN, 3*HIDDEN)   lanes [0, 96)
W_O_OFF = 128        # (HIDDEN, HIDDEN)     lanes [128, 160)
W_1_OFF = 256        # (HIDDEN, INTER)      lanes [256, 320)
W_2T_OFF = 384       # (HIDDEN, INTER) = w2.T  lanes [384, 448)
W_SLAB_LANES = 512
# Head plane (plane index LAYERS): pooler + classifier weights.
W_POOL_OFF = 0       # (HIDDEN, HIDDEN)
W_CLS_OFF = 128      # (HIDDEN, NUM_CLASSES)

ROWS_PER_LAYER = 8   # b_qkv, bo, ln1_g, ln1_b, b1, b2, ln2_g, ln2_b


def _vec_rows(batch, seq):
    """Row offsets inside the packed (rows, 128) vector-parameter slab."""
    bs = batch * seq
    rows = {"emb_g": 0, "emb_b": 1, "bias": 2, "layer0": 2 + bs}
    rows["pool_b"] = rows["layer0"] + LAYERS * ROWS_PER_LAYER
    rows["cls_b"] = rows["pool_b"] + 1
    rows["total"] = rows["cls_b"] + 1
    return rows


# ---------------- fused Pallas kernel ----------------
def _fused_bert_kernel(x_ref, vec_ref, w_ref, out_ref, ctx_ref, *, batch, seq):
    bs = batch * seq
    rows = _vec_rows(batch, seq)
    L0 = rows["layer0"]

    def vrow(r, n):                       # (1, n) lane slice of one param row
        return vec_ref[r:r + 1, 0:n]

    def ln(v, g, b):
        mu = jnp.mean(v, axis=-1, keepdims=True)
        var = jnp.mean((v - mu) ** 2, axis=-1, keepdims=True)
        return (v - mu) * lax.rsqrt(var + LN_EPS) * g + b

    def gelu(v):
        # TODO(synk): HF BertIntermediate uses exact erf-GELU; tanh approx here.
        c = math.sqrt(2.0 / math.pi)
        return 0.5 * v * (1.0 + jnp.tanh(c * (v + 0.044715 * v * v * v)))

    dn_t = (((1,), (1,)), ((), ()))       # contract last dims: A @ B.T, no transpose op
    scale = 1.0 / math.sqrt(HEAD_DIM)

    # Embedding LayerNorm (dropout p=0.3 is identity at inference).
    x = ln(x_ref[...], vrow(rows["emb_g"], HIDDEN), vrow(rows["emb_b"], HIDDEN))

    # Precomputed additive attention bias (padding + block-diagonal cross-batch
    # mask), already folded on the XLA side.  Shape (bs, bs).
    bias = vec_ref[rows["bias"]:rows["bias"] + bs, 0:bs]

    for l in range(LAYERS):                                   # static unroll
        base = L0 + l * ROWS_PER_LAYER
        wl = w_ref.at[l]                                      # (HIDDEN, 512) ref view
        wqkv = wl[:, W_QKV_OFF:W_QKV_OFF + 3 * HIDDEN]
        wo = wl[:, W_O_OFF:W_O_OFF + HIDDEN]
        w1 = wl[:, W_1_OFF:W_1_OFF + INTER]
        w2t = wl[:, W_2T_OFF:W_2T_OFF + INTER]

        # Fused QKV projection: one (bs, H) @ (H, 3H) matmul.
        qkv = jnp.dot(x, wqkv, preferred_element_type=jnp.float32)
        qkv = qkv + vrow(base + 0, 3 * HIDDEN)

        # Attention: per head, one (bs, bs) score matmul over ALL batches; the
        # block-diagonal bias zeroes cross-batch probabilities exactly.  Each
        # head's context is written into the VMEM scratch (no concats).
        for h in range(NUM_HEADS):
            c0 = h * HEAD_DIM
            qh = qkv[:, c0:c0 + HEAD_DIM]
            kh = qkv[:, HIDDEN + c0:HIDDEN + c0 + HEAD_DIM]
            vh = qkv[:, 2 * HIDDEN + c0:2 * HIDDEN + c0 + HEAD_DIM]
            s = lax.dot_general(qh, kh, dn_t,
                                preferred_element_type=jnp.float32) * scale
            s = s + bias
            s = s - jnp.max(s, axis=-1, keepdims=True)
            p = jnp.exp(s)
            p = p * pl.reciprocal(jnp.sum(p, axis=-1, keepdims=True), approx=True)
            ctx_ref[:, c0:c0 + HEAD_DIM] = jnp.dot(
                p, vh, preferred_element_type=jnp.float32)

        attn_out = jnp.dot(ctx_ref[...], wo, preferred_element_type=jnp.float32)
        attn_out = attn_out + vrow(base + 1, HIDDEN)
        x = ln(attn_out + x, vrow(base + 2, HIDDEN), vrow(base + 3, HIDDEN))

        ffn = jnp.dot(x, w1, preferred_element_type=jnp.float32)
        ffn = gelu(ffn + vrow(base + 4, INTER))
        ffn = lax.dot_general(ffn, w2t, dn_t, preferred_element_type=jnp.float32)
        ffn = ffn + vrow(base + 5, HIDDEN)
        x = ln(ffn + x, vrow(base + 6, HIDDEN), vrow(base + 7, HIDDEN))

    # Pooler on CLS rows, then classifier + sigmoid (dropout identity at eval).
    wh = w_ref.at[LAYERS]
    poolw = wh[:, W_POOL_OFF:W_POOL_OFF + HIDDEN]
    clsw = wh[:, W_CLS_OFF:W_CLS_OFF + NUM_CLASSES]
    cls_rows = jnp.concatenate(
        [x[b * seq:b * seq + 1, :] for b in range(batch)], axis=0)      # (B, H)
    pooled = jnp.dot(cls_rows, poolw, preferred_element_type=jnp.float32)
    pooled = jnp.tanh(pooled + vrow(rows["pool_b"], HIDDEN))
    logits = jnp.dot(pooled, clsw, preferred_element_type=jnp.float32)
    logits = logits + vrow(rows["cls_b"], NUM_CLASSES)
    out_ref[...] = (1.0 / (1.0 + jnp.exp(-logits))).astype(out_ref.dtype)


# ---------------- parameter init (deterministic, synthetic) ----------------
def init_params(key):
    def nrm(k, shape, std=0.02):
        return (std * jax.random.normal(k, shape)).astype(jnp.float32)

    ks = iter(jax.random.split(key, 16))
    zeros = lambda *s: jnp.zeros(s, jnp.float32)
    ones = lambda *s: jnp.ones(s, jnp.float32)

    return {
        "word_emb": nrm(next(ks), (VOCAB, HIDDEN)),
        "pos_emb": nrm(next(ks), (MAX_POS, HIDDEN)),
        "type_emb": nrm(next(ks), (TYPE_VOCAB, HIDDEN)),
        "emb_ln_g": ones(1, HIDDEN), "emb_ln_b": zeros(1, HIDDEN),
        "w_qkv": nrm(next(ks), (LAYERS, HIDDEN, 3 * HIDDEN)),
        "b_qkv": zeros(LAYERS, 1, 3 * HIDDEN),
        "wo": nrm(next(ks), (LAYERS, HIDDEN, HIDDEN)),
        "bo": zeros(LAYERS, 1, HIDDEN),
        "ln1_g": ones(LAYERS, 1, HIDDEN), "ln1_b": zeros(LAYERS, 1, HIDDEN),
        "w1": nrm(next(ks), (LAYERS, HIDDEN, INTER)),
        "b1": zeros(LAYERS, 1, INTER),
        "w2": nrm(next(ks), (LAYERS, INTER, HIDDEN)),
        "b2": zeros(LAYERS, 1, HIDDEN),
        "ln2_g": ones(LAYERS, 1, HIDDEN), "ln2_b": zeros(LAYERS, 1, HIDDEN),
        "pool_w": nrm(next(ks), (HIDDEN, HIDDEN)),
        "pool_b": zeros(1, HIDDEN),
        "cls_w": nrm(next(ks), (HIDDEN, NUM_CLASSES)),
        "cls_b": zeros(1, NUM_CLASSES),
    }


def pack_params(params, batch, seq):
    """Pack weights into one lane-aligned slab and all vector params into one
    (rows, 128) slab (attention-bias rows are filled per-call in forward)."""
    w_slab = jnp.zeros((LAYERS + 1, HIDDEN, W_SLAB_LANES), jnp.float32)
    for l in range(LAYERS):
        w_slab = w_slab.at[l, :, W_QKV_OFF:W_QKV_OFF + 3 * HIDDEN].set(params["w_qkv"][l])
        w_slab = w_slab.at[l, :, W_O_OFF:W_O_OFF + HIDDEN].set(params["wo"][l])
        w_slab = w_slab.at[l, :, W_1_OFF:W_1_OFF + INTER].set(params["w1"][l])
        w_slab = w_slab.at[l, :, W_2T_OFF:W_2T_OFF + INTER].set(params["w2"][l].T)
    w_slab = w_slab.at[LAYERS, :, W_POOL_OFF:W_POOL_OFF + HIDDEN].set(params["pool_w"])
    w_slab = w_slab.at[LAYERS, :, W_CLS_OFF:W_CLS_OFF + NUM_CLASSES].set(params["cls_w"])

    rows = _vec_rows(batch, seq)
    vec = jnp.zeros((rows["total"], 128), jnp.float32)

    def put(slab, row, v):
        v = jnp.asarray(v).reshape(-1)
        return slab.at[row, 0:v.shape[0]].set(v)

    vec = put(vec, rows["emb_g"], params["emb_ln_g"])
    vec = put(vec, rows["emb_b"], params["emb_ln_b"])
    for l in range(LAYERS):
        base = rows["layer0"] + l * ROWS_PER_LAYER
        vec = put(vec, base + 0, params["b_qkv"][l])
        vec = put(vec, base + 1, params["bo"][l])
        vec = put(vec, base + 2, params["ln1_g"][l])
        vec = put(vec, base + 3, params["ln1_b"][l])
        vec = put(vec, base + 4, params["b1"][l])
        vec = put(vec, base + 5, params["b2"][l])
        vec = put(vec, base + 6, params["ln2_g"][l])
        vec = put(vec, base + 7, params["ln2_b"][l])
    vec = put(vec, rows["pool_b"], params["pool_b"])
    vec = put(vec, rows["cls_b"], params["cls_b"])
    return {"w_slab": w_slab, "vec_base": vec}


# ---------------- forward pass ----------------
def emotion_tagger_forward(params, packed, input_ids, attention_mask,
                           token_type_ids=None):
    B, S = input_ids.shape
    bs = B * S
    if token_type_ids is None:
        token_type_ids = jnp.zeros_like(input_ids)

    # Embedding table gathers stay in XLA (glue); everything downstream runs in
    # one fused, gridless Pallas call with all tensors VMEM-resident.
    # TODO(synk): could fuse the gather via PrefetchScalarGridSpec + pl.Element.
    emb = (params["word_emb"][input_ids]
           + params["pos_emb"][:S][None, :, :]
           + params["type_emb"][token_type_ids]).astype(jnp.float32)
    x = emb.reshape(bs, HIDDEN)

    # Full additive attention bias precomputed XLA-side: HF padding mask on the
    # key axis plus a block-diagonal mask so per-head attention over all
    # batches never mixes batches.  Folded into the vector-param slab.
    rows = _vec_rows(B, S)
    assert packed["vec_base"].shape[0] == rows["total"]
    key_bias = (1.0 - attention_mask.astype(jnp.float32)) * -10000.0     # (B, S)
    batch_ids = jnp.repeat(jnp.arange(B), S)                             # (bs,)
    same_batch = batch_ids[:, None] == batch_ids[None, :]
    bias = jnp.where(same_batch, key_bias.reshape(1, bs), -10000.0)      # (bs, bs)
    vecs = packed["vec_base"].at[rows["bias"]:rows["bias"] + bs, 0:bs].set(bias)

    kernel = functools.partial(_fused_bert_kernel, batch=B, seq=S)
    vmem_spec = pl.BlockSpec(memory_space=pltpu.MemorySpace.VMEM)
    return pl.pallas_call(
        kernel,
        out_shape=jax.ShapeDtypeStruct((B, NUM_CLASSES), jnp.float32),
        in_specs=[vmem_spec, vmem_spec, vmem_spec],
        out_specs=vmem_spec,
        scratch_shapes=[pltpu.VMEM((bs, HIDDEN), jnp.float32)],
    )(x, vecs, packed["w_slab"])


# ---------------- pure-JAX reference (correctness check) ----------------
def _forward_ref(params, input_ids, attention_mask, token_type_ids=None):
    B, S = input_ids.shape
    if token_type_ids is None:
        token_type_ids = jnp.zeros_like(input_ids)

    def ln(v, g, b):
        mu = jnp.mean(v, axis=-1, keepdims=True)
        var = jnp.mean((v - mu) ** 2, axis=-1, keepdims=True)
        return (v - mu) * lax.rsqrt(var + LN_EPS) * g + b

    def gelu(v):
        c = math.sqrt(2.0 / math.pi)
        return 0.5 * v * (1.0 + jnp.tanh(c * (v + 0.044715 * v ** 3)))

    emb = (params["word_emb"][input_ids]
           + params["pos_emb"][:S][None, :, :]
           + params["type_emb"][token_type_ids]).astype(jnp.float32)
    x = ln(emb.reshape(B * S, HIDDEN), params["emb_ln_g"], params["emb_ln_b"])
    bias = ((1.0 - attention_mask.astype(jnp.float32)) * -10000.0)[:, None, None, :]

    for l in range(LAYERS):
        qkv = x @ params["w_qkv"][l] + params["b_qkv"][l]
        q, k, v = jnp.split(qkv, 3, axis=-1)

        def heads(t):
            return t.reshape(B, S, NUM_HEADS, HEAD_DIM).transpose(0, 2, 1, 3)

        qh, kh, vh = heads(q), heads(k), heads(v)
        s = jnp.einsum("bhqd,bhkd->bhqk", qh, kh) / math.sqrt(HEAD_DIM) + bias
        p = jax.nn.softmax(s, axis=-1)
        ctx = jnp.einsum("bhqk,bhkd->bhqd", p, vh).transpose(0, 2, 1, 3)
        ctx = ctx.reshape(B * S, HIDDEN)
        attn_out = ctx @ params["wo"][l] + params["bo"][l]
        x = ln(attn_out + x, params["ln1_g"][l], params["ln1_b"][l])
        h = gelu(x @ params["w1"][l] + params["b1"][l])
        ffn = h @ params["w2"][l] + params["b2"][l]
        x = ln(ffn + x, params["ln2_g"][l], params["ln2_b"][l])

    cls_tok = x.reshape(B, S, HIDDEN)[:, 0, :]
    pooled = jnp.tanh(cls_tok @ params["pool_w"] + params["pool_b"])
    logits = pooled @ params["cls_w"] + params["cls_b"]
    return jax.nn.sigmoid(logits)


if __name__ == "__main__":
    key = jax.random.PRNGKey(0)
    pkey, ikey = jax.random.split(key)
    params = init_params(pkey)
    packed = pack_params(params, BATCH, SEQ)

    input_ids = jax.random.randint(ikey, (BATCH, SEQ), 0, VOCAB, dtype=jnp.int32)
    attention_mask = jnp.ones((BATCH, SEQ), jnp.int32).at[1, 6:].set(0)  # pad 2nd sample
    token_type_ids = jnp.zeros((BATCH, SEQ), jnp.int32)

    probs = emotion_tagger_forward(params, packed, input_ids, attention_mask,
                                   token_type_ids)
    probs = jax.block_until_ready(probs)

    assert probs.shape == (BATCH, NUM_CLASSES)
    assert bool(jnp.all((probs >= 0.0) & (probs <= 1.0)))

    ref = _forward_ref(params, input_ids, attention_mask, token_type_ids)
    assert bool(jnp.allclose(probs, ref, rtol=5e-2, atol=5e-3))

    print("KERNEL_OK")
</pallas_src>

<mosaic_0001>
module attributes {stable_mosaic.version = 11 : i64} {
  func.func @_fused_bert_kernel(%arg0: memref<16x32xf32, #tpu.memory_space<vmem>>, %arg1: memref<36x128xf32, #tpu.memory_space<vmem>>, %arg2: memref<3x32x512xf32, #tpu.memory_space<vmem>>, %arg3: memref<2x4xf32, #tpu.memory_space<vmem>>, %arg4: memref<16x32xf32, #tpu.memory_space<vmem>>) attributes {dimension_semantics = [], scalar_prefetch = 0 : i64, scratch_operands = 1 : i64, tpu.core_type = #tpu.core_type<tc>} {
    %c0 = arith.constant 0 : index
    %c0_0 = arith.constant 0 : index
    %0 = vector.load %arg0[%c0, %c0_0] : memref<16x32xf32, #tpu.memory_space<vmem>>, vector<16x32xf32>
    %c0_1 = arith.constant 0 : index
    %c0_2 = arith.constant 0 : index
    %1 = vector.load %arg1[%c0_1, %c0_2] : memref<36x128xf32, #tpu.memory_space<vmem>>, vector<1x32xf32>
    %c1 = arith.constant 1 : index
    %c0_3 = arith.constant 0 : index
    %2 = vector.load %arg1[%c1, %c0_3] : memref<36x128xf32, #tpu.memory_space<vmem>>, vector<1x32xf32>
    %cst = arith.constant dense<0.000000e+00> : vector<16xf32>
    %3 = vector.multi_reduction <add>, %0, %cst [1] : vector<16x32xf32> to vector<16xf32>
    %4 = vector.shape_cast %3 : vector<16xf32> to vector<16x1xf32>
    %cst_4 = arith.constant 3.200000e+01 : f32
    %5 = vector.broadcast %cst_4 : f32 to vector<16x1xf32>
    %6 = arith.divf %4, %5 : vector<16x1xf32>
    %7 = vector.broadcast %6 : vector<16x1xf32> to vector<16x32xf32>
    %8 = arith.subf %0, %7 : vector<16x32xf32>
    %9 = arith.mulf %8, %8 : vector<16x32xf32>
    %cst_5 = arith.constant dense<0.000000e+00> : vector<16xf32>
    %10 = vector.multi_reduction <add>, %9, %cst_5 [1] : vector<16x32xf32> to vector<16xf32>
    %11 = vector.shape_cast %10 : vector<16xf32> to vector<16x1xf32>
    %cst_6 = arith.constant 3.200000e+01 : f32
    %12 = vector.broadcast %cst_6 : f32 to vector<16x1xf32>
    %13 = arith.divf %11, %12 : vector<16x1xf32>
    %14 = vector.broadcast %6 : vector<16x1xf32> to vector<16x32xf32>
    %15 = arith.subf %0, %14 : vector<16x32xf32>
    %cst_7 = arith.constant 9.99999996E-13 : f32
    %16 = vector.broadcast %cst_7 : f32 to vector<16x1xf32>
    %17 = arith.addf %13, %16 : vector<16x1xf32>
    %18 = math.rsqrt %17 : vector<16x1xf32>
    %19 = vector.broadcast %18 : vector<16x1xf32> to vector<16x32xf32>
    %20 = arith.mulf %15, %19 : vector<16x32xf32>
    %21 = vector.broadcast %1 : vector<1x32xf32> to vector<16x32xf32>
    %22 = arith.mulf %20, %21 : vector<16x32xf32>
    %23 = vector.broadcast %2 : vector<1x32xf32> to vector<16x32xf32>
    %24 = arith.addf %22, %23 : vector<16x32xf32>
    %c2 = arith.constant 2 : index
    %c0_8 = arith.constant 0 : index
    %25 = vector.load %arg1[%c2, %c0_8] : memref<36x128xf32, #tpu.memory_space<vmem>>, vector<16x16xf32>
    %c0_i32 = arith.constant 0 : i32
    %c0_i32_9 = arith.constant 0 : i32
    %c0_i32_10 = arith.constant 0 : i32
    %26 = tpu.memref_slice %arg2[%c0_i32, %c0_i32_9, %c0_i32_10] : memref<3x32x512xf32, #tpu.memory_space<vmem>> -> memref<1x32x512xf32, #tpu.memory_space<vmem>>
    %27 = tpu.memref_squeeze %26 : memref<1x32x512xf32, #tpu.memory_space<vmem>> -> memref<32x512xf32, #tpu.memory_space<vmem>>
    %c0_11 = arith.constant 0 : index
    %c0_12 = arith.constant 0 : index
    %28 = vector.load %27[%c0_11, %c0_12] : memref<32x512xf32, #tpu.memory_space<vmem>>, vector<32x96xf32>
    %c0_i32_13 = arith.constant 0 : i32
    %c0_i32_14 = arith.constant 0 : i32
    %c0_i32_15 = arith.constant 0 : i32
    %29 = tpu.memref_slice %arg2[%c0_i32_13, %c0_i32_14, %c0_i32_15] : memref<3x32x512xf32, #tpu.memory_space<vmem>> -> memref<1x32x512xf32, #tpu.memory_space<vmem>>
    %30 = tpu.memref_squeeze %29 : memref<1x32x512xf32, #tpu.memory_space<vmem>> -> memref<32x512xf32, #tpu.memory_space<vmem>>
    %c0_16 = arith.constant 0 : index
    %c128 = arith.constant 128 : index
    %31 = vector.load %30[%c0_16, %c128] : memref<32x512xf32, #tpu.memory_space<vmem>>, vector<32x32xf32>
    %c0_i32_17 = arith.constant 0 : i32
    %c0_i32_18 = arith.constant 0 : i32
    %c0_i32_19 = arith.constant 0 : i32
    %32 = tpu.memref_slice %arg2[%c0_i32_17, %c0_i32_18, %c0_i32_19] : memref<3x32x512xf32, #tpu.memory_space<vmem>> -> memref<1x32x512xf32, #tpu.memory_space<vmem>>
    %33 = tpu.memref_squeeze %32 : memref<1x32x512xf32, #tpu.memory_space<vmem>> -> memref<32x512xf32, #tpu.memory_space<vmem>>
    %c0_20 = arith.constant 0 : index
    %c256 = arith.constant 256 : index
    %34 = vector.load %33[%c0_20, %c256] : memref<32x512xf32, #tpu.memory_space<vmem>>, vector<32x64xf32>
    %c0_i32_21 = arith.constant 0 : i32
    %c0_i32_22 = arith.constant 0 : i32
    %c0_i32_23 = arith.constant 0 : i32
    %35 = tpu.memref_slice %arg2[%c0_i32_21, %c0_i32_22, %c0_i32_23] : memref<3x32x512xf32, #tpu.memory_space<vmem>> -> memref<1x32x512xf32, #tpu.memory_space<vmem>>
    %36 = tpu.memref_squeeze %35 : memref<1x32x512xf32, #tpu.memory_space<vmem>> -> memref<32x512xf32, #tpu.memory_space<vmem>>
    %c0_24 = arith.constant 0 : index
    %c384 = arith.constant 384 : index
    %37 = vector.load %36[%c0_24, %c384] : memref<32x512xf32, #tpu.memory_space<vmem>>, vector<32x64xf32>
    %cst_25 = arith.constant dense<0.000000e+00> : vector<16x96xf32>
    %38 = tpu.matmul %24, %28, %cst_25 {dimension_numbers = #tpu.dot_dimension_numbers<[1], [0], [0], [1], [0, 0, 1, 1], [], []>} : vector<16x32xf32>, vector<32x96xf32>, vector<16x96xf32> -> vector<16x96xf32>
    %c18 = arith.constant 18 : index
    %c0_26 = arith.constant 0 : index
    %39 = vector.load %arg1[%c18, %c0_26] : memref<36x128xf32, #tpu.memory_space<vmem>>, vector<1x96xf32>
    %40 = vector.broadcast %39 : vector<1x96xf32> to vector<16x96xf32>
    %41 = arith.addf %38, %40 : vector<16x96xf32>
    %42 = vector.extract_strided_slice %41 {offsets = [0, 0], sizes = [16, 16], strides = [1, 1]} : vector<16x96xf32> to vector<16x16xf32>
    %43 = vector.extract_strided_slice %41 {offsets = [0, 32], sizes = [16, 16], strides = [1, 1]} : vector<16x96xf32> to vector<16x16xf32>
    %44 = vector.extract_strided_slice %41 {offsets = [0, 64], sizes = [16, 16], strides = [1, 1]} : vector<16x96xf32> to vector<16x16xf32>
    %cst_27 = arith.constant dense<0.000000e+00> : vector<16x16xf32>
    %45 = tpu.matmul %42, %43, %cst_27 {dimension_numbers = #tpu.dot_dimension_numbers<[1], [1], [0], [0], [0, 0, 1, 0], [], []>} : vector<16x16xf32>, vector<16x16xf32>, vector<16x16xf32> -> vector<16x16xf32>
    %cst_28 = arith.constant 2.500000e-01 : f32
    %46 = vector.broadcast %cst_28 : f32 to vector<16x16xf32>
    %47 = arith.mulf %45, %46 : vector<16x16xf32>
    %48 = arith.addf %47, %25 : vector<16x16xf32>
    %cst_29 = arith.constant dense<0xFF800000> : vector<16xf32>
    %49 = vector.multi_reduction <maximumf>, %48, %cst_29 [1] : vector<16x16xf32> to vector<16xf32>
    %50 = vector.shape_cast %49 : vector<16xf32> to vector<16x1xf32>
    %51 = vector.broadcast %50 : vector<16x1xf32> to vector<16x16xf32>
    %52 = arith.subf %48, %51 : vector<16x16xf32>
    %53 = math.exp %52 : vector<16x16xf32>
    %cst_30 = arith.constant dense<0.000000e+00> : vector<16xf32>
    %54 = vector.multi_reduction <add>, %53, %cst_30 [1] : vector<16x16xf32> to vector<16xf32>
    %55 = vector.shape_cast %54 : vector<16xf32> to vector<16x1xf32>
    %56 = tpu.reciprocal %55 {approx = true} : vector<16x1xf32> -> vector<16x1xf32>
    %57 = vector.broadcast %56 : vector<16x1xf32> to vector<16x16xf32>
    %58 = arith.mulf %53, %57 : vector<16x16xf32>
    %cst_31 = arith.constant dense<0.000000e+00> : vector<16x16xf32>
    %59 = tpu.matmul %58, %44, %cst_31 {dimension_numbers = #tpu.dot_dimension_numbers<[1], [0], [0], [1], [0, 0, 1, 1], [], []>} : vector<16x16xf32>, vector<16x16xf32>, vector<16x16xf32> -> vector<16x16xf32>
    %c0_32 = arith.constant 0 : index
    %c0_33 = arith.constant 0 : index
    %60 = vector.load %arg4[%c0_32, %c0_33] : memref<16x32xf32, #tpu.memory_space<vmem>>, vector<16x16xf32>
    tpu.vector_store %arg4[%c0_32, %c0_33], %59 {strides = array<i32>} : memref<16x32xf32, #tpu.memory_space<vmem>>, vector<16x16xf32>,
    %61 = vector.extract_strided_slice %41 {offsets = [0, 16], sizes = [16, 16], strides = [1, 1]} : vector<16x96xf32> to vector<16x16xf32>
    %62 = vector.extract_strided_slice %41 {offsets = [0, 48], sizes = [16, 16], strides = [1, 1]} : vector<16x96xf32> to vector<16x16xf32>
    %63 = vector.extract_strided_slice %41 {offsets = [0, 80], sizes = [16, 16], strides = [1, 1]} : vector<16x96xf32> to vector<16x16xf32>
    %cst_34 = arith.constant dense<0.000000e+00> : vector<16x16xf32>
    %64 = tpu.matmul %61, %62, %cst_34 {dimension_numbers = #tpu.dot_dimension_numbers<[1], [1], [0], [0], [0, 0, 1, 0], [], []>} : vector<16x16xf32>, vector<16x16xf32>, vector<16x16xf32> -> vector<16x16xf32>
    %cst_35 = arith.constant 2.500000e-01 : f32
    %65 = vector.broadcast %cst_35 : f32 to vector<16x16xf32>
    %66 = arith.mulf %64, %65 : vector<16x16xf32>
    %67 = arith.addf %66, %25 : vector<16x16xf32>
    %cst_36 = arith.constant dense<0xFF800000> : vector<16xf32>
    %68 = vector.multi_reduction <maximumf>, %67, %cst_36 [1] : vector<16x16xf32> to vector<16xf32>
    %69 = vector.shape_cast %68 : vector<16xf32> to vector<16x1xf32>
    %70 = vector.broadcast %69 : vector<16x1xf32> to vector<16x16xf32>
    %71 = arith.subf %67, %70 : vector<16x16xf32>
    %72 = math.exp %71 : vector<16x16xf32>
    %cst_37 = arith.constant dense<0.000000e+00> : vector<16xf32>
    %73 = vector.multi_reduction <add>, %72, %cst_37 [1] : vector<16x16xf32> to vector<16xf32>
    %74 = vector.shape_cast %73 : vector<16xf32> to vector<16x1xf32>
    %75 = tpu.reciprocal %74 {approx = true} : vector<16x1xf32> -> vector<16x1xf32>
    %76 = vector.broadcast %75 : vector<16x1xf32> to vector<16x16xf32>
    %77 = arith.mulf %72, %76 : vector<16x16xf32>
    %cst_38 = arith.constant dense<0.000000e+00> : vector<16x16xf32>
    %78 = tpu.matmul %77, %63, %cst_38 {dimension_numbers = #tpu.dot_dimension_numbers<[1], [0], [0], [1], [0, 0, 1, 1], [], []>} : vector<16x16xf32>, vector<16x16xf32>, vector<16x16xf32> -> vector<16x16xf32>
    %c0_39 = arith.constant 0 : index
    %c16 = arith.constant 16 : index
    %79 = vector.load %arg4[%c0_39, %c16] : memref<16x32xf32, #tpu.memory_space<vmem>>, vector<16x16xf32>
    tpu.vector_store %arg4[%c0_39, %c16], %78 {strides = array<i32>} : memref<16x32xf32, #tpu.memory_space<vmem>>, vector<16x16xf32>,
    %c0_40 = arith.constant 0 : index
    %c0_41 = arith.constant 0 : index
    %80 = vector.load %arg4[%c0_40, %c0_41] : memref<16x32xf32, #tpu.memory_space<vmem>>, vector<16x32xf32>
    %cst_42 = arith.constant dense<0.000000e+00> : vector<16x32xf32>
    %81 = tpu.matmul %80, %31, %cst_42 {dimension_numbers = #tpu.dot_dimension_numbers<[1], [0], [0], [1], [0, 0, 1, 1], [], []>} : vector<16x32xf32>, vector<32x32xf32>, vector<16x32xf32> -> vector<16x32xf32>
    %c19 = arith.constant 19 : index
    %c0_43 = arith.constant 0 : index
    %82 = vector.load %arg1[%c19, %c0_43] : memref<36x128xf32, #tpu.memory_space<vmem>>, vector<1x32xf32>
    %83 = vector.broadcast %82 : vector<1x32xf32> to vector<16x32xf32>
    %84 = arith.addf %81, %83 : vector<16x32xf32>
    %85 = arith.addf %84, %24 : vector<16x32xf32>
    %c20 = arith.constant 20 : index
    %c0_44 = arith.constant 0 : index
    %86 = vector.load %arg1[%c20, %c0_44] : memref<36x128xf32, #tpu.memory_space<vmem>>, vector<1x32xf32>
    %c21 = arith.constant 21 : index
    %c0_45 = arith.constant 0 : index
    %87 = vector.load %arg1[%c21, %c0_45] : memref<36x128xf32, #tpu.memory_space<vmem>>, vector<1x32xf32>
    %cst_46 = arith.constant dense<0.000000e+00> : vector<16xf32>
    %88 = vector.multi_reduction <add>, %85, %cst_46 [1] : vector<16x32xf32> to vector<16xf32>
    %89 = vector.shape_cast %88 : vector<16xf32> to vector<16x1xf32>
    %cst_47 = arith.constant 3.200000e+01 : f32
    %90 = vector.broadcast %cst_47 : f32 to vector<16x1xf32>
    %91 = arith.divf %89, %90 : vector<16x1xf32>
    %92 = vector.broadcast %91 : vector<16x1xf32> to vector<16x32xf32>
    %93 = arith.subf %85, %92 : vector<16x32xf32>
    %94 = arith.mulf %93, %93 : vector<16x32xf32>
    %cst_48 = arith.constant dense<0.000000e+00> : vector<16xf32>
    %95 = vector.multi_reduction <add>, %94, %cst_48 [1] : vector<16x32xf32> to vector<16xf32>
    %96 = vector.shape_cast %95 : vector<16xf32> to vector<16x1xf32>
    %cst_49 = arith.constant 3.200000e+01 : f32
    %97 = vector.broadcast %cst_49 : f32 to vector<16x1xf32>
    %98 = arith.divf %96, %97 : vector<16x1xf32>
    %99 = vector.broadcast %91 : vector<16x1xf32> to vector<16x32xf32>
    %100 = arith.subf %85, %99 : vector<16x32xf32>
    %cst_50 = arith.constant 9.99999996E-13 : f32
    %101 = vector.broadcast %cst_50 : f32 to vector<16x1xf32>
    %102 = arith.addf %98, %101 : vector<16x1xf32>
    %103 = math.rsqrt %102 : vector<16x1xf32>
    %104 = vector.broadcast %103 : vector<16x1xf32> to vector<16x32xf32>
    %105 = arith.mulf %100, %104 : vector<16x32xf32>
    %106 = vector.broadcast %86 : vector<1x32xf32> to vector<16x32xf32>
    %107 = arith.mulf %105, %106 : vector<16x32xf32>
    %108 = vector.broadcast %87 : vector<1x32xf32> to vector<16x32xf32>
    %109 = arith.addf %107, %108 : vector<16x32xf32>
    %cst_51 = arith.constant dense<0.000000e+00> : vector<16x64xf32>
    %110 = tpu.matmul %109, %34, %cst_51 {dimension_numbers = #tpu.dot_dimension_numbers<[1], [0], [0], [1], [0, 0, 1, 1], [], []>} : vector<16x32xf32>, vector<32x64xf32>, vector<16x64xf32> -> vector<16x64xf32>
    %c22 = arith.constant 22 : index
    %c0_52 = arith.constant 0 : index
    %111 = vector.load %arg1[%c22, %c0_52] : memref<36x128xf32, #tpu.memory_space<vmem>>, vector<1x64xf32>
    %112 = vector.broadcast %111 : vector<1x64xf32> to vector<16x64xf32>
    %113 = arith.addf %110, %112 : vector<16x64xf32>
    %cst_53 = arith.constant 5.000000e-01 : f32
    %114 = vector.broadcast %cst_53 : f32 to vector<16x64xf32>
    %115 = arith.mulf %114, %113 : vector<16x64xf32>
    %cst_54 = arith.constant 4.471500e-02 : f32
    %116 = vector.broadcast %cst_54 : f32 to vector<16x64xf32>
    %117 = arith.mulf %116, %113 : vector<16x64xf32>
    %118 = arith.mulf %117, %113 : vector<16x64xf32>
    %119 = arith.mulf %118, %113 : vector<16x64xf32>
    %120 = arith.addf %113, %119 : vector<16x64xf32>
    %cst_55 = arith.constant 0.797884583 : f32
    %121 = vector.broadcast %cst_55 : f32 to vector<16x64xf32>
    %122 = arith.mulf %121, %120 : vector<16x64xf32>
    %123 = math.tanh %122 : vector<16x64xf32>
    %cst_56 = arith.constant 1.000000e+00 : f32
    %124 = vector.broadcast %cst_56 : f32 to vector<16x64xf32>
    %125 = arith.addf %124, %123 : vector<16x64xf32>
    %126 = arith.mulf %115, %125 : vector<16x64xf32>
    %cst_57 = arith.constant dense<0.000000e+00> : vector<16x32xf32>
    %127 = tpu.matmul %126, %37, %cst_57 {dimension_numbers = #tpu.dot_dimension_numbers<[1], [1], [0], [0], [0, 0, 1, 0], [], []>} : vector<16x64xf32>, vector<32x64xf32>, vector<16x32xf32> -> vector<16x32xf32>
    %c23 = arith.constant 23 : index
    %c0_58 = arith.constant 0 : index
    %128 = vector.load %arg1[%c23, %c0_58] : memref<36x128xf32, #tpu.memory_space<vmem>>, vector<1x32xf32>
    %129 = vector.broadcast %128 : vector<1x32xf32> to vector<16x32xf32>
    %130 = arith.addf %127, %129 : vector<16x32xf32>
    %131 = arith.addf %130, %109 : vector<16x32xf32>
    %c24 = arith.constant 24 : index
    %c0_59 = arith.constant 0 : index
    %132 = vector.load %arg1[%c24, %c0_59] : memref<36x128xf32, #tpu.memory_space<vmem>>, vector<1x32xf32>
    %c25 = arith.constant 25 : index
    %c0_60 = arith.constant 0 : index
    %133 = vector.load %arg1[%c25, %c0_60] : memref<36x128xf32, #tpu.memory_space<vmem>>, vector<1x32xf32>
    %cst_61 = arith.constant dense<0.000000e+00> : vector<16xf32>
    %134 = vector.multi_reduction <add>, %131, %cst_61 [1] : vector<16x32xf32> to vector<16xf32>
    %135 = vector.shape_cast %134 : vector<16xf32> to vector<16x1xf32>
    %cst_62 = arith.constant 3.200000e+01 : f32
    %136 = vector.broadcast %cst_62 : f32 to vector<16x1xf32>
    %137 = arith.divf %135, %136 : vector<16x1xf32>
    %138 = vector.broadcast %137 : vector<16x1xf32> to vector<16x32xf32>
    %139 = arith.subf %131, %138 : vector<16x32xf32>
    %140 = arith.mulf %139, %139 : vector<16x32xf32>
    %cst_63 = arith.constant dense<0.000000e+00> : vector<16xf32>
    %141 = vector.multi_reduction <add>, %140, %cst_63 [1] : vector<16x32xf32> to vector<16xf32>
    %142 = vector.shape_cast %141 : vector<16xf32> to vector<16x1xf32>
    %cst_64 = arith.constant 3.200000e+01 : f32
    %143 = vector.broadcast %cst_64 : f32 to vector<16x1xf32>
    %144 = arith.divf %142, %143 : vector<16x1xf32>
    %145 = vector.broadcast %137 : vector<16x1xf32> to vector<16x32xf32>
    %146 = arith.subf %131, %145 : vector<16x32xf32>
    %cst_65 = arith.constant 9.99999996E-13 : f32
    %147 = vector.broadcast %cst_65 : f32 to vector<16x1xf32>
    %148 = arith.addf %144, %147 : vector<16x1xf32>
    %149 = math.rsqrt %148 : vector<16x1xf32>
    %150 = vector.broadcast %149 : vector<16x1xf32> to vector<16x32xf32>
    %151 = arith.mulf %146, %150 : vector<16x32xf32>
    %152 = vector.broadcast %132 : vector<1x32xf32> to vector<16x32xf32>
    %153 = arith.mulf %151, %152 : vector<16x32xf32>
    %154 = vector.broadcast %133 : vector<1x32xf32> to vector<16x32xf32>
    %155 = arith.addf %153, %154 : vector<16x32xf32>
    %c1_i32 = arith.constant 1 : i32
    %c0_i32_66 = arith.constant 0 : i32
    %c0_i32_67 = arith.constant 0 : i32
    %156 = tpu.memref_slice %arg2[%c1_i32, %c0_i32_66, %c0_i32_67] : memref<3x32x512xf32, #tpu.memory_space<vmem>> -> memref<1x32x512xf32, #tpu.memory_space<vmem>>
    %157 = tpu.memref_squeeze %156 : memref<1x32x512xf32, #tpu.memory_space<vmem>> -> memref<32x512xf32, #tpu.memory_space<vmem>>
    %c0_68 = arith.constant 0 : index
    %c0_69 = arith.constant 0 : index
    %158 = vector.load %157[%c0_68, %c0_69] : memref<32x512xf32, #tpu.memory_space<vmem>>, vector<32x96xf32>
    %c1_i32_70 = arith.constant 1 : i32
    %c0_i32_71 = arith.constant 0 : i32
    %c0_i32_72 = arith.constant 0 : i32
    %159 = tpu.memref_slice %arg2[%c1_i32_70, %c0_i32_71, %c0_i32_72] : memref<3x32x512xf32, #tpu.memory_space<vmem>> -> memref<1x32x512xf32, #tpu.memory_space<vmem>>
    %160 = tpu.memref_squeeze %159 : memref<1x32x512xf32, #tpu.memory_space<vmem>> -> memref<32x512xf32, #tpu.memory_space<vmem>>
    %c0_73 = arith.constant 0 : index
    %c128_74 = arith.constant 128 : index
    %161 = vector.load %160[%c0_73, %c128_74] : memref<32x512xf32, #tpu.memory_space<vmem>>, vector<32x32xf32>
    %c1_i32_75 = arith.constant 1 : i32
    %c0_i32_76 = arith.constant 0 : i32
    %c0_i32_77 = arith.constant 0 : i32
    %162 = tpu.memref_slice %arg2[%c1_i32_75, %c0_i32_76, %c0_i32_77] : memref<3x32x512xf32, #tpu.memory_space<vmem>> -> memref<1x32x512xf32, #tpu.memory_space<vmem>>
    %163 = tpu.memref_squeeze %162 : memref<1x32x512xf32, #tpu.memory_space<vmem>> -> memref<32x512xf32, #tpu.memory_space<vmem>>
    %c0_78 = arith.constant 0 : index
    %c256_79 = arith.constant 256 : index
    %164 = vector.load %163[%c0_78, %c256_79] : memref<32x512xf32, #tpu.memory_space<vmem>>, vector<32x64xf32>
    %c1_i32_80 = arith.constant 1 : i32
    %c0_i32_81 = arith.constant 0 : i32
    %c0_i32_82 = arith.constant 0 : i32
    %165 = tpu.memref_slice %arg2[%c1_i32_80, %c0_i32_81, %c0_i32_82] : memref<3x32x512xf32, #tpu.memory_space<vmem>> -> memref<1x32x512xf32, #tpu.memory_space<vmem>>
    %166 = tpu.memref_squeeze %165 : memref<1x32x512xf32, #tpu.memory_space<vmem>> -> memref<32x512xf32, #tpu.memory_space<vmem>>
    %c0_83 = arith.constant 0 : index
    %c384_84 = arith.constant 384 : index
    %167 = vector.load %166[%c0_83, %c384_84] : memref<32x512xf32, #tpu.memory_space<vmem>>, vector<32x64xf32>
    %cst_85 = arith.constant dense<0.000000e+00> : vector<16x96xf32>
    %168 = tpu.matmul %155, %158, %cst_85 {dimension_numbers = #tpu.dot_dimension_numbers<[1], [0], [0], [1], [0, 0, 1, 1], [], []>} : vector<16x32xf32>, vector<32x96xf32>, vector<16x96xf32> -> vector<16x96xf32>
    %c26 = arith.constant 26 : index
    %c0_86 = arith.constant 0 : index
    %169 = vector.load %arg1[%c26, %c0_86] : memref<36x128xf32, #tpu.memory_space<vmem>>, vector<1x96xf32>
    %170 = vector.broadcast %169 : vector<1x96xf32> to vector<16x96xf32>
    %171 = arith.addf %168, %170 : vector<16x96xf32>
    %172 = vector.extract_strided_slice %171 {offsets = [0, 0], sizes = [16, 16], strides = [1, 1]} : vector<16x96xf32> to vector<16x16xf32>
    %173 = vector.extract_strided_slice %171 {offsets = [0, 32], sizes = [16, 16], strides = [1, 1]} : vector<16x96xf32> to vector<16x16xf32>
    %174 = vector.extract_strided_slice %171 {offsets = [0, 64], sizes = [16, 16], strides = [1, 1]} : vector<16x96xf32> to vector<16x16xf32>
    %cst_87 = arith.constant dense<0.000000e+00> : vector<16x16xf32>
    %175 = tpu.matmul %172, %173, %cst_87 {dimension_numbers = #tpu.dot_dimension_numbers<[1], [1], [0], [0], [0, 0, 1, 0], [], []>} : vector<16x16xf32>, vector<16x16xf32>, vector<16x16xf32> -> vector<16x16xf32>
    %cst_88 = arith.constant 2.500000e-01 : f32
    %176 = vector.broadcast %cst_88 : f32 to vector<16x16xf32>
    %177 = arith.mulf %175, %176 : vector<16x16xf32>
    %178 = arith.addf %177, %25 : vector<16x16xf32>
    %cst_89 = arith.constant dense<0xFF800000> : vector<16xf32>
    %179 = vector.multi_reduction <maximumf>, %178, %cst_89 [1] : vector<16x16xf32> to vector<16xf32>
    %180 = vector.shape_cast %179 : vector<16xf32> to vector<16x1xf32>
    %181 = vector.broadcast %180 : vector<16x1xf32> to vector<16x16xf32>
    %182 = arith.subf %178, %181 : vector<16x16xf32>
    %183 = math.exp %182 : vector<16x16xf32>
    %cst_90 = arith.constant dense<0.000000e+00> : vector<16xf32>
    %184 = vector.multi_reduction <add>, %183, %cst_90 [1] : vector<16x16xf32> to vector<16xf32>
    %185 = vector.shape_cast %184 : vector<16xf32> to vector<16x1xf32>
    %186 = tpu.reciprocal %185 {approx = true} : vector<16x1xf32> -> vector<16x1xf32>
    %187 = vector.broadcast %186 : vector<16x1xf32> to vector<16x16xf32>
    %188 = arith.mulf %183, %187 : vector<16x16xf32>
    %cst_91 = arith.constant dense<0.000000e+00> : vector<16x16xf32>
    %189 = tpu.matmul %188, %174, %cst_91 {dimension_numbers = #tpu.dot_dimension_numbers<[1], [0], [0], [1], [0, 0, 1, 1], [], []>} : vector<16x16xf32>, vector<16x16xf32>, vector<16x16xf32> -> vector<16x16xf32>
    %c0_92 = arith.constant 0 : index
    %c0_93 = arith.constant 0 : index
    %190 = vector.load %arg4[%c0_92, %c0_93] : memref<16x32xf32, #tpu.memory_space<vmem>>, vector<16x16xf32>
    tpu.vector_store %arg4[%c0_92, %c0_93], %189 {strides = array<i32>} : memref<16x32xf32, #tpu.memory_space<vmem>>, vector<16x16xf32>,
    %191 = vector.extract_strided_slice %171 {offsets = [0, 16], sizes = [16, 16], strides = [1, 1]} : vector<16x96xf32> to vector<16x16xf32>
    %192 = vector.extract_strided_slice %171 {offsets = [0, 48], sizes = [16, 16], strides = [1, 1]} : vector<16x96xf32> to vector<16x16xf32>
    %193 = vector.extract_strided_slice %171 {offsets = [0, 80], sizes = [16, 16], strides = [1, 1]} : vector<16x96xf32> to vector<16x16xf32>
    %cst_94 = arith.constant dense<0.000000e+00> : vector<16x16xf32>
    %194 = tpu.matmul %191, %192, %cst_94 {dimension_numbers = #tpu.dot_dimension_numbers<[1], [1], [0], [0], [0, 0, 1, 0], [], []>} : vector<16x16xf32>, vector<16x16xf32>, vector<16x16xf32> -> vector<16x16xf32>
    %cst_95 = arith.constant 2.500000e-01 : f32
    %195 = vector.broadcast %cst_95 : f32 to vector<16x16xf32>
    %196 = arith.mulf %194, %195 : vector<16x16xf32>
    %197 = arith.addf %196, %25 : vector<16x16xf32>
    %cst_96 = arith.constant dense<0xFF800000> : vector<16xf32>
    %198 = vector.multi_reduction <maximumf>, %197, %cst_96 [1] : vector<16x16xf32> to vector<16xf32>
    %199 = vector.shape_cast %198 : vector<16xf32> to vector<16x1xf32>
    %200 = vector.broadcast %199 : vector<16x1xf32> to vector<16x16xf32>
    %201 = arith.subf %197, %200 : vector<16x16xf32>
    %202 = math.exp %201 : vector<16x16xf32>
    %cst_97 = arith.constant dense<0.000000e+00> : vector<16xf32>
    %203 = vector.multi_reduction <add>, %202, %cst_97 [1] : vector<16x16xf32> to vector<16xf32>
    %204 = vector.shape_cast %203 : vector<16xf32> to vector<16x1xf32>
    %205 = tpu.reciprocal %204 {approx = true} : vector<16x1xf32> -> vector<16x1xf32>
    %206 = vector.broadcast %205 : vector<16x1xf32> to vector<16x16xf32>
    %207 = arith.mulf %202, %206 : vector<16x16xf32>
    %cst_98 = arith.constant dense<0.000000e+00> : vector<16x16xf32>
    %208 = tpu.matmul %207, %193, %cst_98 {dimension_numbers = #tpu.dot_dimension_numbers<[1], [0], [0], [1], [0, 0, 1, 1], [], []>} : vector<16x16xf32>, vector<16x16xf32>, vector<16x16xf32> -> vector<16x16xf32>
    %c0_99 = arith.constant 0 : index
    %c16_100 = arith.constant 16 : index
    %209 = vector.load %arg4[%c0_99, %c16_100] : memref<16x32xf32, #tpu.memory_space<vmem>>, vector<16x16xf32>
    tpu.vector_store %arg4[%c0_99, %c16_100], %208 {strides = array<i32>} : memref<16x32xf32, #tpu.memory_space<vmem>>, vector<16x16xf32>,
    %c0_101 = arith.constant 0 : index
    %c0_102 = arith.constant 0 : index
    %210 = vector.load %arg4[%c0_101, %c0_102] : memref<16x32xf32, #tpu.memory_space<vmem>>, vector<16x32xf32>
    %cst_103 = arith.constant dense<0.000000e+00> : vector<16x32xf32>
    %211 = tpu.matmul %210, %161, %cst_103 {dimension_numbers = #tpu.dot_dimension_numbers<[1], [0], [0], [1], [0, 0, 1, 1], [], []>} : vector<16x32xf32>, vector<32x32xf32>, vector<16x32xf32> -> vector<16x32xf32>
    %c27 = arith.constant 27 : index
    %c0_104 = arith.constant 0 : index
    %212 = vector.load %arg1[%c27, %c0_104] : memref<36x128xf32, #tpu.memory_space<vmem>>, vector<1x32xf32>
    %213 = vector.broadcast %212 : vector<1x32xf32> to vector<16x32xf32>
    %214 = arith.addf %211, %213 : vector<16x32xf32>
    %215 = arith.addf %214, %155 : vector<16x32xf32>
    %c28 = arith.constant 28 : index
    %c0_105 = arith.constant 0 : index
    %216 = vector.load %arg1[%c28, %c0_105] : memref<36x128xf32, #tpu.memory_space<vmem>>, vector<1x32xf32>
    %c29 = arith.constant 29 : index
    %c0_106 = arith.constant 0 : index
    %217 = vector.load %arg1[%c29, %c0_106] : memref<36x128xf32, #tpu.memory_space<vmem>>, vector<1x32xf32>
    %cst_107 = arith.constant dense<0.000000e+00> : vector<16xf32>
    %218 = vector.multi_reduction <add>, %215, %cst_107 [1] : vector<16x32xf32> to vector<16xf32>
    %219 = vector.shape_cast %218 : vector<16xf32> to vector<16x1xf32>
    %cst_108 = arith.constant 3.200000e+01 : f32
    %220 = vector.broadcast %cst_108 : f32 to vector<16x1xf32>
    %221 = arith.divf %219, %220 : vector<16x1xf32>
    %222 = vector.broadcast %221 : vector<16x1xf32> to vector<16x32xf32>
    %223 = arith.subf %215, %222 : vector<16x32xf32>
    %224 = arith.mulf %223, %223 : vector<16x32xf32>
    %cst_109 = arith.constant dense<0.000000e+00> : vector<16xf32>
    %225 = vector.multi_reduction <add>, %224, %cst_109 [1] : vector<16x32xf32> to vector<16xf32>
    %226 = vector.shape_cast %225 : vector<16xf32> to vector<16x1xf32>
    %cst_110 = arith.constant 3.200000e+01 : f32
    %227 = vector.broadcast %cst_110 : f32 to vector<16x1xf32>
    %228 = arith.divf %226, %227 : vector<16x1xf32>
    %229 = vector.broadcast %221 : vector<16x1xf32> to vector<16x32xf32>
    %230 = arith.subf %215, %229 : vector<16x32xf32>
    %cst_111 = arith.constant 9.99999996E-13 : f32
    %231 = vector.broadcast %cst_111 : f32 to vector<16x1xf32>
    %232 = arith.addf %228, %231 : vector<16x1xf32>
    %233 = math.rsqrt %232 : vector<16x1xf32>
    %234 = vector.broadcast %233 : vector<16x1xf32> to vector<16x32xf32>
    %235 = arith.mulf %230, %234 : vector<16x32xf32>
    %236 = vector.broadcast %216 : vector<1x32xf32> to vector<16x32xf32>
    %237 = arith.mulf %235, %236 : vector<16x32xf32>
    %238 = vector.broadcast %217 : vector<1x32xf32> to vector<16x32xf32>
    %239 = arith.addf %237, %238 : vector<16x32xf32>
    %cst_112 = arith.constant dense<0.000000e+00> : vector<16x64xf32>
    %240 = tpu.matmul %239, %164, %cst_112 {dimension_numbers = #tpu.dot_dimension_numbers<[1], [0], [0], [1], [0, 0, 1, 1], [], []>} : vector<16x32xf32>, vector<32x64xf32>, vector<16x64xf32> -> vector<16x64xf32>
    %c30 = arith.constant 30 : index
    %c0_113 = arith.constant 0 : index
    %241 = vector.load %arg1[%c30, %c0_113] : memref<36x128xf32, #tpu.memory_space<vmem>>, vector<1x64xf32>
    %242 = vector.broadcast %241 : vector<1x64xf32> to vector<16x64xf32>
    %243 = arith.addf %240, %242 : vector<16x64xf32>
    %cst_114 = arith.constant 5.000000e-01 : f32
    %244 = vector.broadcast %cst_114 : f32 to vector<16x64xf32>
    %245 = arith.mulf %244, %243 : vector<16x64xf32>
    %cst_115 = arith.constant 4.471500e-02 : f32
    %246 = vector.broadcast %cst_115 : f32 to vector<16x64xf32>
    %247 = arith.mulf %246, %243 : vector<16x64xf32>
    %248 = arith.mulf %247, %243 : vector<16x64xf32>
    %249 = arith.mulf %248, %243 : vector<16x64xf32>
    %250 = arith.addf %243, %249 : vector<16x64xf32>
    %cst_116 = arith.constant 0.797884583 : f32
    %251 = vector.broadcast %cst_116 : f32 to vector<16x64xf32>
    %252 = arith.mulf %251, %250 : vector<16x64xf32>
    %253 = math.tanh %252 : vector<16x64xf32>
    %cst_117 = arith.constant 1.000000e+00 : f32
    %254 = vector.broadcast %cst_117 : f32 to vector<16x64xf32>
    %255 = arith.addf %254, %253 : vector<16x64xf32>
    %256 = arith.mulf %245, %255 : vector<16x64xf32>
    %cst_118 = arith.constant dense<0.000000e+00> : vector<16x32xf32>
    %257 = tpu.matmul %256, %167, %cst_118 {dimension_numbers = #tpu.dot_dimension_numbers<[1], [1], [0], [0], [0, 0, 1, 0], [], []>} : vector<16x64xf32>, vector<32x64xf32>, vector<16x32xf32> -> vector<16x32xf32>
    %c31 = arith.constant 31 : index
    %c0_119 = arith.constant 0 : index
    %258 = vector.load %arg1[%c31, %c0_119] : memref<36x128xf32, #tpu.memory_space<vmem>>, vector<1x32xf32>
    %259 = vector.broadcast %258 : vector<1x32xf32> to vector<16x32xf32>
    %260 = arith.addf %257, %259 : vector<16x32xf32>
    %261 = arith.addf %260, %239 : vector<16x32xf32>
    %c32 = arith.constant 32 : index
    %c0_120 = arith.constant 0 : index
    %262 = vector.load %arg1[%c32, %c0_120] : memref<36x128xf32, #tpu.memory_space<vmem>>, vector<1x32xf32>
    %c33 = arith.constant 33 : index
    %c0_121 = arith.constant 0 : index
    %263 = vector.load %arg1[%c33, %c0_121] : memref<36x128xf32, #tpu.memory_space<vmem>>, vector<1x32xf32>
    %cst_122 = arith.constant dense<0.000000e+00> : vector<16xf32>
    %264 = vector.multi_reduction <add>, %261, %cst_122 [1] : vector<16x32xf32> to vector<16xf32>
    %265 = vector.shape_cast %264 : vector<16xf32> to vector<16x1xf32>
    %cst_123 = arith.constant 3.200000e+01 : f32
    %266 = vector.broadcast %cst_123 : f32 to vector<16x1xf32>
    %267 = arith.divf %265, %266 : vector<16x1xf32>
    %268 = vector.broadcast %267 : vector<16x1xf32> to vector<16x32xf32>
    %269 = arith.subf %261, %268 : vector<16x32xf32>
    %270 = arith.mulf %269, %269 : vector<16x32xf32>
    %cst_124 = arith.constant dense<0.000000e+00> : vector<16xf32>
    %271 = vector.multi_reduction <add>, %270, %cst_124 [1] : vector<16x32xf32> to vector<16xf32>
    %272 = vector.shape_cast %271 : vector<16xf32> to vector<16x1xf32>
    %cst_125 = arith.constant 3.200000e+01 : f32
    %273 = vector.broadcast %cst_125 : f32 to vector<16x1xf32>
    %274 = arith.divf %272, %273 : vector<16x1xf32>
    %275 = vector.broadcast %267 : vector<16x1xf32> to vector<16x32xf32>
    %276 = arith.subf %261, %275 : vector<16x32xf32>
    %cst_126 = arith.constant 9.99999996E-13 : f32
    %277 = vector.broadcast %cst_126 : f32 to vector<16x1xf32>
    %278 = arith.addf %274, %277 : vector<16x1xf32>
    %279 = math.rsqrt %278 : vector<16x1xf32>
    %280 = vector.broadcast %279 : vector<16x1xf32> to vector<16x32xf32>
    %281 = arith.mulf %276, %280 : vector<16x32xf32>
    %282 = vector.broadcast %262 : vector<1x32xf32> to vector<16x32xf32>
    %283 = arith.mulf %281, %282 : vector<16x32xf32>
    %284 = vector.broadcast %263 : vector<1x32xf32> to vector<16x32xf32>
    %285 = arith.addf %283, %284 : vector<16x32xf32>
    %c2_i32 = arith.constant 2 : i32
    %c0_i32_127 = arith.constant 0 : i32
    %c0_i32_128 = arith.constant 0 : i32
    %286 = tpu.memref_slice %arg2[%c2_i32, %c0_i32_127, %c0_i32_128] : memref<3x32x512xf32, #tpu.memory_space<vmem>> -> memref<1x32x512xf32, #tpu.memory_space<vmem>>
    %287 = tpu.memref_squeeze %286 : memref<1x32x512xf32, #tpu.memory_space<vmem>> -> memref<32x512xf32, #tpu.memory_space<vmem>>
    %c0_129 = arith.constant 0 : index
    %c0_130 = arith.constant 0 : index
    %288 = vector.load %287[%c0_129, %c0_130] : memref<32x512xf32, #tpu.memory_space<vmem>>, vector<32x32xf32>
    %c2_i32_131 = arith.constant 2 : i32
    %c0_i32_132 = arith.constant 0 : i32
    %c0_i32_133 = arith.constant 0 : i32
    %289 = tpu.memref_slice %arg2[%c2_i32_131, %c0_i32_132, %c0_i32_133] : memref<3x32x512xf32, #tpu.memory_space<vmem>> -> memref<1x32x512xf32, #tpu.memory_space<vmem>>
    %290 = tpu.memref_squeeze %289 : memref<1x32x512xf32, #tpu.memory_space<vmem>> -> memref<32x512xf32, #tpu.memory_space<vmem>>
    %c0_134 = arith.constant 0 : index
    %c128_135 = arith.constant 128 : index
    %291 = vector.load %290[%c0_134, %c128_135] : memref<32x512xf32, #tpu.memory_space<vmem>>, vector<32x4xf32>
    %292 = vector.extract_strided_slice %285 {offsets = [0, 0], sizes = [1, 32], strides = [1, 1]} : vector<16x32xf32> to vector<1x32xf32>
    %293 = vector.extract_strided_slice %285 {offsets = [8, 0], sizes = [1, 32], strides = [1, 1]} : vector<16x32xf32> to vector<1x32xf32>
    %294 = tpu.concatenate %292, %293 in 0 : vector<1x32xf32>, vector<1x32xf32> -> vector<2x32xf32>
    %cst_136 = arith.constant dense<0.000000e+00> : vector<2x32xf32>
    %295 = tpu.matmul %294, %288, %cst_136 {dimension_numbers = #tpu.dot_dimension_numbers<[1], [0], [0], [1], [0, 0, 1, 1], [], []>} : vector<2x32xf32>, vector<32x32xf32>, vector<2x32xf32> -> vector<2x32xf32>
    %c34 = arith.constant 34 : index
    %c0_137 = arith.constant 0 : index
    %296 = vector.load %arg1[%c34, %c0_137] : memref<36x128xf32, #tpu.memory_space<vmem>>, vector<1x32xf32>
    %297 = vector.broadcast %296 : vector<1x32xf32> to vector<2x32xf32>
    %298 = arith.addf %295, %297 : vector<2x32xf32>
    %299 = math.tanh %298 : vector<2x32xf32>
    %cst_138 = arith.constant dense<0.000000e+00> : vector<2x4xf32>
    %300 = tpu.matmul %299, %291, %cst_138 {dimension_numbers = #tpu.dot_dimension_numbers<[1], [0], [0], [1], [0, 0, 1, 1], [], []>} : vector<2x32xf32>, vector<32x4xf32>, vector<2x4xf32> -> vector<2x4xf32>
    %c35 = arith.constant 35 : index
    %c0_139 = arith.constant 0 : index
    %301 = vector.load %arg1[%c35, %c0_139] : memref<36x128xf32, #tpu.memory_space<vmem>>, vector<1x4xf32>
    %302 = vector.broadcast %301 : vector<1x4xf32> to vector<2x4xf32>
    %303 = arith.addf %300, %302 : vector<2x4xf32>
    %cst_140 = arith.constant 0.000000e+00 : f32
    %304 = vector.broadcast %cst_140 : f32 to vector<2x4xf32>
    %305 = arith.subf %304, %303 : vector<2x4xf32>
    %306 = math.exp %305 : vector<2x4xf32>
    %cst_141 = arith.constant 1.000000e+00 : f32
    %307 = vector.broadcast %cst_141 : f32 to vector<2x4xf32>
    %308 = arith.addf %307, %306 : vector<2x4xf32>
    %cst_142 = arith.constant 1.000000e+00 : f32
    %309 = vector.broadcast %cst_142 : f32 to vector<2x4xf32>
    %310 = arith.divf %309, %308 : vector<2x4xf32>
    %c0_143 = arith.constant 0 : index
    %c0_144 = arith.constant 0 : index
    %311 = vector.load %arg3[%c0_143, %c0_144] : memref<2x4xf32, #tpu.memory_space<vmem>>, vector<2x4xf32>
    tpu.vector_store %arg3[%c0_143, %c0_144], %310 {strides = array<i32>} : memref<2x4xf32, #tpu.memory_space<vmem>>, vector<2x4xf32>,
    return
  }
}

</mosaic_0001>

<bundles_post_ra>
// kernel: tpu_custom_call.1
= control target key start
LH: loop header
LB: loop body
LE: loop exit
PB: predicated region body
PF: predicated region fallthrough
CT: control target
= control target key end

     0   :  { %8 = vsyncpa [#allocation4], 0  ;;  %s3028_s0 = inlined_call_operand.hbm [shape: f32[16,32], index: 0, kind: input, shape index: {}]   ;;  %s3029_s1 = inlined_call_operand.hbm [shape: f32[36,128], index: 1, kind: input, shape index: {}]   ;;  %s3030_s2 = inlined_call_operand.hbm [shape: f32[3,32,512], index: 2, kind: input, shape index: {}]   ;;  %s3031_s3 = inlined_call_operand.hbm [shape: f32[2,4], index: 3, kind: output, shape index: {}]  }
   0x1   :  { %9 = vsyncpa [#allocation7], 0 }
   0x2   :  { %10 = vsyncpa [#allocation5], 0  ;;  %s2756_s12 = smov [#allocation6]   ;;  %s2757_s14 = smov [#allocation3]  }
   0x3   :  { %s28_s13 = sshll.u32 %s2756_s12, 4  ;;  %s16_s15 = sshll.u32 %s2757_s14, 4  ;;  %s29_s13 = int_to_ptr.vmem [resolvable:$true] %s28_s13  ;;  %s2793_s15 = int_to_ptr.vmem [resolvable:$true] %s16_s15 }
   0x4   :  { %s2662_s18 = scalar_lea.hbm %s3029_s1, 640 }
   0x5   :  { %p2663_p0 = scmp.ne.s32.totalorder %s3029_s1, %s2662_s18  ;;  %p2666_p1 = scmp.lt.u32.totalorder %s2662_s18, %s3029_s1 }
   0x7   :  { %p2668_p2 = pnand %p2666_p1, %p2663_p0 }
   0x9   :  { %2671 = shalt.err (!%p2668_p2)
}
   0xa   :  { %s2672_s23 = scalar_lea.vmem %s29_s13, 640  ;;  %p2677_p4 = scmp.lt.s32.totalorder %s29_s13, %s29_s13 }
   0xb   :  { %p2673_p3 = scmp.ne.s32.totalorder %s29_s13, %s2672_s23  ;;  %p2678_p5 = scmp.lt.s32.totalorder %s2672_s23, %s2672_s23 }
   0xd   :  { %p2679_p6 = por %p2678_p5, %p2677_p4 }
   0xf   :  { %p2680_p7 = pnand %p2679_p6, %p2673_p3 }
  0x11   :  { %2683 = shalt.err (!%p2680_p7)
}
  0x12   :  { %s2758_s24 = smov 128   ;;  %s2759_s25 = smov 8  }
  0x13   :  { %34 = dma.hbm_to_vmem [thread:$0]  %s3029_s1, 640, %s29_s13, [#allocation7], %s2758_s24, %s2758_s24, %s2759_s25  }
  0x14   :  { %s2684_s30 = scalar_lea.hbm %s3028_s0, 256 }
  0x15   :  { %p2685_p8 = scmp.ne.s32.totalorder %s3028_s0, %s2684_s30  ;;  %p2688_p9 = scmp.lt.u32.totalorder %s2684_s30, %s3028_s0 }
  0x17   :  { %p2690_p10 = pnand %p2688_p9, %p2685_p8 }
  0x19   :  { %2693 = shalt.err (!%p2690_p10)
}
  0x1a   :  { %s2694_s8 = scalar_lea.vmem %s2793_s15, 256  ;;  %p2699_p12 = scmp.lt.s32.totalorder %s2793_s15, %s2793_s15 }
  0x1b   :  { %p2695_p11 = scmp.ne.s32.totalorder %s2793_s15, %s2694_s8  ;;  %p2700_p13 = scmp.lt.s32.totalorder %s2694_s8, %s2694_s8 }
  0x1d   :  { %p2701_p0 = por %p2700_p13, %p2699_p12 }
  0x1f   :  { %p2702_p1 = pnand %p2701_p0, %p2695_p11 }
  0x21   :  { %2705 = shalt.err (!%p2702_p1)
}
  0x22   :  { %22 = dma.hbm_to_vmem [thread:$0]  %s3028_s0, 256, %s2793_s15, [#allocation4], %s2758_s24, %s2758_s24, %s2759_s25  }
  0x23   :  { %s2760_s10 = smov [#allocation8]   ;;  %s2706_s14 = scalar_lea.hbm %s3030_s2, 6144 }
  0x24   :  { %s40_s11 = sshll.u32 %s2760_s10, 4  ;;  %p2707_p2 = scmp.ne.s32.totalorder %s3030_s2, %s2706_s14  ;;  %s41_s11 = int_to_ptr.vmem [resolvable:$true] %s40_s11 }
  0x25   :  { %p2710_p3 = scmp.lt.u32.totalorder %s2706_s14, %s3030_s2 }
  0x27   :  { %p2712_p4 = pnand %p2710_p3, %p2707_p2 }
  0x29   :  { %2715 = shalt.err (!%p2712_p4)
}
  0x2a   :  { %s2716_s20 = scalar_lea.vmem %s41_s11, 6144  ;;  %p2721_p6 = scmp.lt.s32.totalorder %s41_s11, %s41_s11 }
  0x2b   :  { %p2717_p5 = scmp.ne.s32.totalorder %s41_s11, %s2716_s20  ;;  %p2722_p7 = scmp.lt.s32.totalorder %s2716_s20, %s2716_s20 }
  0x2d   :  { %p2723_p8 = por %p2722_p7, %p2721_p6 }
  0x2f   :  { %p2724_p9 = pnand %p2723_p8, %p2717_p5 }
  0x31   :  { %2727 = shalt.err (!%p2724_p9)
}
  0x32   :  { %s2761_s0 = smov 512   ;;  %s2762_s15 = smov 32  }
  0x33   :  { %46 = dma.hbm_to_vmem [thread:$0]  %s3030_s2, 6144, %s41_s11, [#allocation7], %s2761_s0, %s2761_s0, %s2762_s15  }
  0x34   :  { %2750 = dma.done.wait [#allocation4], 256  }
  0x35   :  { %2751 = vsyncadd [#allocation4], 4294967040 }
  0x36   :  { %2752 = dma.done.wait [#allocation7], 6784  }
  0x37   :  { %2753 = vsyncadd [#allocation7], 4294960512  ;;  %vm60_vm0 = vcmask 261120   ;;  %v56_v0 = vld [vmem:[#allocation3] sm:$0xff]  ;;  %v57_v1 = vld [vmem:[#allocation3 + $0x8] sm:$0xff]  ;;  %vm210_vm1 = vcmask 130048  }
  0x38   :  { %v61_v2 = vsel %vm60_vm0, %v56_v0, 0.0  ;;  %v64_v3 = vsel %vm60_vm0, %v57_v1, 0.0  ;;  %v102_v14 = vld [vmem:[#allocation8] sm:$0xff]  ;;  %v2089_v27 = vld [vmem:[#allocation6] ss:$0 sm:$0xff]  ;;  %s2763_s2 = smov 80   ;;  %vm2859_vm2 = vmpackc.low %vm210_vm1, %vm210_vm1 }
  0x39   :  { %62 = vadd.xlane.f32.xlu0 %v61_v2  ;;  %v103_v15 = vld [vmem:[#allocation8 + $0x20] sm:$0xff]  ;;  %v2090_v29 = vld [vmem:[#allocation6 + $0x1] ss:$0 sm:$0xff]  ;;  %v2091_v36 = vld [vmem:[#allocation6 + $0x12] ss:$0 sm:$0xff]  ;;  %s2764_s23 = smov 96  }
  0x3a   :  { %v104_v16 = vld [vmem:[#allocation8 + $0x40] sm:$0xff]  ;;  %v2415_v17 = vpack.c.bf16 %v103_v15, %v102_v14  ;;  %s2765_s24 = smov 112   ;;  %s2766_s25 = smov 48   ;;  %vm621_vm3 = vcmask 261248   ;;  %vm863_vm4 = vcmask 523264   ;;  %vm2770_vm6 = vmmov 0  }
  0x3b   :  { %v105_v18 = vld [vmem:[#allocation8 + $0x60] sm:$0xff]  ;;  %s2767_s26 = smov 64   ;;  %s2768_s27 = smov 16   ;;  %vm2916_vm5 = vmpackc.low %vm863_vm4, %vm863_vm4  ;;  %vm1906_vm7 = vcmask 1040384   ;;  %vm2071_vm8 = vcmask 25600  }
  0x3c   :  { %v2419_v19 = vpack.c.bf16 %v105_v18, %v104_v16  ;;  %2416 = vmatprep.subr.bf16.mxu0 %v2415_v17  ;;  %v2874_v54 = vld [vmem:[#allocation6 + $0xa] sm:$0xff]  ;;  %v2876_v57 = vld [vmem:[#allocation6 + $0x2] sm:$0xff]  ;;  %s2772_s28 = smov [#allocation9]  }
  0x3d   :  { %65 = vadd.xlane.f32.xlu0 %v64_v3  ;;  %2418 = vmatpush3.bf16.msra.mxu0 %v2415_v17  ;;  %s2079_s29 = sshll.u32 %s2772_s28, 4  ;;  %s2080_s29 = int_to_ptr.vmem [resolvable:$true] %s2079_s29 }
  0x3e   :  { %2420 = vmatprep.subr.bf16.mxu0 %v2419_v19  ;;  %s2728_s30 = scalar_lea.vmem %s2080_s29, 32  ;;  %p2733_p11 = scmp.lt.s32.totalorder %s2080_s29, %s2080_s29 }
  0x3f   :  { %p2729_p10 = scmp.ne.s32.totalorder %s2080_s29, %s2728_s30  ;;  %p2734_p12 = scmp.lt.s32.totalorder %s2728_s30, %s2728_s30 }
  0x41   :  { %2422 = vmatpush3.bf16.msra.mxu0 %v2419_v19  ;;  %p2735_p13 = por %p2734_p12, %p2733_p11 }
  0x43   :  { %p2736_p0 = pnand %p2735_p13, %p2729_p10 }
  0xc6   :  { %v63_v4 = vpop.xlane.xlu0 %62 }
  0xc7   :  { %v68_v5 = vmul.f32 0.03125, %v63_v4 }
  0xc9   :  { %v70_v6 = vsub.f32 %v56_v0, %v68_v5 }
  0xca   :  { %v66_v7 = vpop.xlane.xlu0 %65 }
  0xcb   :  { %v69_v8 = vmul.f32 0.03125, %v66_v7  ;;  %v72_v9 = vmul.f32 %v70_v6, %v70_v6 }
  0xcd   :  { %v71_v10 = vsub.f32 %v57_v1, %v69_v8  ;;  %v74_v11 = vsel %vm60_vm0, %v72_v9, 0.0 }
  0xce   :  { %75 = vadd.xlane.f32.xlu1 %v74_v11 }
  0xcf   :  { %v73_v12 = vmul.f32 %v71_v10, %v71_v10 }
  0xd1   :  { %v77_v13 = vsel %vm60_vm0, %v73_v12, 0.0 }
  0xd2   :  { %78 = vadd.xlane.f32.xlu1 %v77_v13 }
 0x15b   :  { %v76_v20 = vpop.xlane.xlu1 %75 }
 0x15c   :  { %v80_v21 = vmul.f32 0.03125, %v76_v20 }
 0x15e   :  { %v82_v22 = vadd.f32 1e-12, %v80_v21 }
 0x15f   :  { %v79_v23 = vpop.xlane.xlu1 %78 }
 0x160   :  { %2596 = vrsqrt.f32 %v82_v22  ;;  %v81_v24 = vmul.f32 0.03125, %v79_v23 }
 0x162   :  { %v83_v25 = vadd.f32 1e-12, %v81_v24 }
 0x164   :  { %2598 = vrsqrt.f32 %v83_v25 }
 0x16a   :  { %v2597_v26 = vpop.eup %2596 }
 0x16b   :  { %v86_v28 = vmul.f32 %v2597_v26, %v70_v6 }
 0x16d   :  { %v92_v30 = vmul.f32 %v2089_v27, %v86_v28 }
 0x16e   :  { %v2599_v31 = vpop.eup %2598 }
 0x16f   :  { %v87_v32 = vmul.f32 %v2599_v31, %v71_v10  ;;  %v2840_v33 = vadd.f32 %v2090_v29, %v92_v30 }
 0x171   :  { %v93_v34 = vmul.f32 %v2089_v27, %v87_v32  ;;  %2257 = vmatprep.mubr.msk.f32.mxu0 %vm60_vm0, %v2840_v33 }
 0x173   :  { %v2844_v35 = vadd.f32 %v2090_v29, %v93_v34 }
 0x175   :  { %2258 = vmatmul.mubr.msk.f32.vlgmr.msra.gmra.mrb[0].mxu0 %vm60_vm0, %v2844_v35 }
 0x248   :  { %v2259_v37 = vpop.f32.mrb[0].mxu0 }
 0x249   :  { %v201_v38 = vadd.f32 %v2259_v37, %v2091_v36  ;;  %v195_v39 = vpop.f32.mrb[1].mxu0 }
 0x24a   :  { %v196_v40 = vadd.f32 %v2091_v36, %v195_v39 }
 0x24c   :  { %2264 = vmatprep.mubr.msk.f32.mxu1 %vm210_vm1, %v196_v40  ;;  %v2849_v41 = vpack.i.bf16 %v201_v38, %v196_v40 }
 0x24e   :  { %2562 = vrot.lane.b32.xlu1 %v2849_v41, %s2763_s2  ;;  %2557 = vrot.lane.b32.xlu0 %v2849_v41, %s2764_s23 }
 0x252   :  { %409 = vrot.lane.b32.xlu1 %v196_v40, %s2765_s24 }
 0x256   :  { %411 = vrot.lane.b32.xlu1 %v201_v38, %s2765_s24 }
 0x2c0   :  { %v2563_v42 = vpop.permute.xlu1 %2562  ;;  %v2558_v43 = vpop.permute.xlu0 %2557 }
 0x2c1   :  { %v2565_v44 = vunpack.i.h.bf16 %v2563_v42  ;;  %v2564_v45 = vunpack.i.l.bf16 %v2563_v42  ;;  %v2560_v46 = vunpack.i.h.bf16 %v2558_v43  ;;  %v2559_v47 = vunpack.i.l.bf16 %v2558_v43 }
 0x2c3   :  { %v2423_v49 = vpack.c.bf16 %v2560_v46, %v2559_v47  ;;  %v2433_v50 = vpack.c.bf16 %v2565_v44, %v2564_v45 }
 0x2c4   :  { %v410_v51 = vpop.permute.xlu1 %409 }
 0x2c5   :  { %2425 = vmatprep.subr.msk.bf16.mxu1 %vm2859_vm2, %v2423_v49 }
 0x2c6   :  { %2428 = vmatpush3.bf16.xpose.msk.msra.mxu1 %vm2859_vm2, %v2423_v49 }
 0x2c7   :  { %2435 = vmatprep.subr.msk.bf16.mxu1 %vm2859_vm2, %v2433_v50 }
 0x2c8   :  { %v412_v52 = vpop.permute.xlu1 %411 }
 0x2cd   :  { %2265 = vmatmul.mubr.msk.f32.vlgmr.msra.gmra.mrb[0].mxu1 %vm210_vm1, %v201_v38 }
 0x2ce   :  { %2438 = vmatpush3.bf16.xpose.msk.msra.mxu1 %vm2859_vm2, %v2433_v50  ;;  %2278 = vmatprep.mubr.msk.f32.mxu1 %vm210_vm1, %v410_v51  ;;  %v106_v50 = vld [vmem:[#allocation8 + $0x8] sm:$0xff] }
 0x2cf   :  { %v107_v51 = vld [vmem:[#allocation8 + $0x28] sm:$0xff] }
 0x2d5   :  { %2279 = vmatmul.mubr.msk.f32.vlgmr.msra.gmra.mrb[2].mxu1 %vm210_vm1, %v412_v52  ;;  %v2443_v52 = vpack.c.bf16 %v107_v51, %v106_v50  ;;  %v2111_v51 = vld [vmem:[#allocation6 + $0x16] ss:$0 sm:$0xff] }
 0x3a0   :  { %v2266_v53 = vpop.f32.mrb[0].mxu1 }
 0x3a1   :  { %v295_v55 = vmul.f32 0.25, %v2266_v53  ;;  %v285_v56 = vpop.f32.mrb[1].mxu1  ;;  %v108_v53 = vld [vmem:[#allocation8 + $0x48] sm:$0xff] }
 0x3a2   :  { %v294_v58 = vmul.f32 0.25, %v285_v56 }
 0x3a3   :  { %v297_v59 = vadd.f32 %v295_v55, %v2874_v54  ;;  %v109_v55 = vld [vmem:[#allocation8 + $0x68] sm:$0xff] }
 0x3a4   :  { %v296_v60 = vadd.f32 %v294_v58, %v2876_v57  ;;  %v2447_v56 = vpack.c.bf16 %v109_v55, %v108_v53 }
 0x3a5   :  { %v301_v61 = vsel %vm210_vm1, %v297_v59, -inf }
 0x3a6   :  { %302 = vmax.xlane.f32.xlu1 %v301_v61  ;;  %v298_v62 = vsel %vm210_vm1, %v296_v60, -inf }
 0x3a7   :  { %299 = vmax.xlane.f32.xlu0 %v298_v62 }
 0x3a8   :  { %v2280_v63 = vpop.f32.mrb[2].mxu1 }
 0x3a9   :  { %v491_v0 = vpop.f32.mrb[3].mxu1  ;;  %v501_v1 = vmul.f32 0.25, %v2280_v63 }
 0x3aa   :  { %v500_v2 = vmul.f32 0.25, %v491_v0 }
 0x3ab   :  { %v503_v5 = vadd.f32 %v501_v1, %v2874_v54 }
 0x3ac   :  { %v502_v3 = vadd.f32 %v500_v2, %v2876_v57  ;;  %v2106_v2 = vld [vmem:[#allocation6 + $0x13] ss:$0 sm:$0xff] }
 0x3ad   :  { %v507_v6 = vsel %vm210_vm1, %v503_v5, -inf }
 0x3ae   :  { %v504_v4 = vsel %vm210_vm1, %v502_v3, -inf }
 0x3af   :  { %505 = vmax.xlane.f32.xlu0 %v504_v4 }
 0x3b3   :  { %508 = vmax.xlane.f32.xlu0 %v507_v6 }
 0x433   :  { %v303_v7 = vpop.xlane.xlu1 %302 }
 0x434   :  { %v305_v8 = vsub.f32 %v297_v59, %v303_v7  ;;  %v300_v9 = vpop.xlane.xlu0 %299 }
 0x435   :  { %v304_v10 = vsub.f32 %v296_v60, %v300_v9 }
 0x436   :  { %v308_v11 = vmul.f32 1.442695, %v305_v8 }
 0x437   :  { %v306_v12 = vmul.f32 1.442695, %v304_v10 }
 0x438   :  { %2600 = vpow2.f32 %v308_v11 }
 0x439   :  { %2602 = vpow2.f32 %v306_v12 }
 0x43c   :  { %v506_v13 = vpop.xlane.xlu0 %505 }
 0x43d   :  { %v510_v14 = vsub.f32 %v502_v3, %v506_v13 }
 0x43f   :  { %v512_v15 = vmul.f32 1.442695, %v510_v14 }
 0x440   :  { %v509_v16 = vpop.xlane.xlu0 %508 }
 0x441   :  { %2604 = vpow2.f32 %v512_v15  ;;  %v511_v17 = vsub.f32 %v503_v5, %v509_v16 }
 0x442   :  { %v2601_v18 = vpop.eup %2600 }
 0x443   :  { %v2603_v19 = vpop.eup %2602  ;;  %v514_v20 = vmul.f32 1.442695, %v511_v17  ;;  %v313_v21 = vsel %vm210_vm1, %v2601_v18, 0.0 }
 0x444   :  { %314 = vadd.xlane.f32.xlu1 %v313_v21  ;;  %v310_v22 = vsel %vm210_vm1, %v2603_v19, 0.0 }
 0x445   :  { %2606 = vpow2.f32 %v514_v20  ;;  %311 = vadd.xlane.f32.xlu0 %v310_v22  ;;  %v111_v20 = vld [vmem:[#allocation8 + $0x30] sm:$0xff] }
 0x446   :  { %v112_v22 = vld [vmem:[#allocation8 + $0x50] sm:$0xff] }
 0x44b   :  { %v2605_v23 = vpop.eup %2604 }
 0x44c   :  { %v516_v24 = vsel %vm210_vm1, %v2605_v23, 0.0 }
 0x44d   :  { %517 = vadd.xlane.f32.xlu0 %v516_v24 }
 0x44f   :  { %v2607_v25 = vpop.eup %2606 }
 0x450   :  { %v519_v26 = vsel %vm210_vm1, %v2607_v25, 0.0 }
 0x451   :  { %520 = vadd.xlane.f32.xlu1 %v519_v26 }
 0x462   :  { %2572 = vrot.lane.b32.xlu1 %v2849_v41, %s2766_s25 }
 0x463   :  { %2567 = vrot.lane.b32.xlu0 %v2849_v41, %s2767_s26 }
 0x4d1   :  { %v315_v28 = vpop.xlane.xlu1 %314 }
 0x4d2   :  { %v312_v27 = vpop.xlane.xlu0 %311 }
 0x4d3   :  { %2608 = vrcp.f32 %v312_v27 }
 0x4d4   :  { %2610 = vrcp.f32 %v315_v28 }
 0x4da   :  { %v518_v29 = vpop.xlane.xlu0 %517 }
 0x4db   :  { %2612 = vrcp.f32 %v518_v29 }
 0x4dd   :  { %v2609_v30 = vpop.eup %2608 }
 0x4de   :  { %v521_v31 = vpop.xlane.xlu1 %520  ;;  %v2568_v32 = vpop.permute.xlu0 %2567  ;;  %v318_v34 = vmul.f32 %v2609_v30, %v2603_v19 }
 0x4df   :  { %2614 = vrcp.f32 %v521_v31  ;;  %v2570_v36 = vunpack.i.h.bf16 %v2568_v32  ;;  %v2569_v37 = vunpack.i.l.bf16 %v2568_v32  ;;  %v2611_v39 = vpop.eup %2610  ;;  %v2109_v32 = vld [vmem:[#allocation6 + $0x14] ss:$0 sm:$0xff] }
 0x4e0   :  { %2271 = vmatprep.mubr.msk.f32.mxu0 %vm210_vm1, %v318_v34  ;;  %v319_v44 = vmul.f32 %v2611_v39, %v2601_v18 }
 0x4e1   :  { %v2429_v38 = vpack.c.bf16 %v2570_v36, %v2569_v37  ;;  %v2110_v36 = vld [vmem:[#allocation6 + $0x15] ss:$0 sm:$0xff] }
 0x4e2   :  { %v2573_v40 = vpop.permute.xlu1 %2572 }
 0x4e3   :  { %v2575_v42 = vunpack.i.h.bf16 %v2573_v40  ;;  %v2574_v41 = vunpack.i.l.bf16 %v2573_v40  ;;  %2430 = vmatprep.subr.bf16.mxu0 %v2429_v38 }
 0x4e4   :  { %2432 = vmatpush3.bf16.msra.mxu0 %v2429_v38 }
 0x4e5   :  { %v2613_v43 = vpop.eup %2612  ;;  %v2439_v45 = vpack.c.bf16 %v2575_v42, %v2574_v41 }
 0x4e6   :  { %v524_v46 = vmul.f32 %v2613_v43, %v2605_v23  ;;  %v113_v23 = vld [vmem:[#allocation8 + $0x70] sm:$0xff]  ;;  %v114_v43 = vld [vmem:[#allocation8 + $0x18] sm:$0xff] }
 0x4e7   :  { %2272 = vmatmul.mubr.msk.f32.vlgmr.msra.gmra.mrb[2].mxu0 %vm210_vm1, %v319_v44  ;;  %2440 = vmatprep.subr.bf16.mxu0 %v2439_v45  ;;  %v2455_v24 = vpack.c.bf16 %v113_v23, %v112_v22  ;;  %v115_v44 = vld [vmem:[#allocation8 + $0x38] sm:$0xff] }
 0x4e8   :  { %2442 = vmatpush3.bf16.msra.mxu0 %v2439_v45  ;;  %2285 = vmatprep.mubr.msk.f32.mxu0 %vm210_vm1, %v524_v46  ;;  %v2459_v45 = vpack.c.bf16 %v115_v44, %v114_v43  ;;  %v2121_v44 = vld [vmem:[#allocation6 + $0x18] ss:$0 sm:$0xff] }
 0x4e9   :  { %v2615_v47 = vpop.eup %2614  ;;  %2444 = vmatprep.subr.bf16.mxu0 %v2443_v52 }
 0x4ea   :  { %v525_v49 = vmul.f32 %v2615_v47, %v2607_v25  ;;  %v116_v47 = vld [vmem:[#allocation8 + $0x58] sm:$0xff] }
 0x4ec   :  { %2286 = vmatmul.mubr.msk.f32.vlgmr.msra.gmra.mrb[4].mxu0 %vm210_vm1, %v525_v49  ;;  %v117_v49 = vld [vmem:[#allocation8 + $0x78] sm:$0xff] }
 0x4ed   :  { %2446 = vmatpush3.bf16.msra.mxu0 %v2443_v52  ;;  %v2465_v50 = vpack.c.bf16 %v117_v49, %v116_v47 }
 0x4ee   :  { %2448 = vmatprep.subr.bf16.mxu0 %v2447_v56 }
 0x4f1   :  { %2450 = vmatpush3.bf16.msra.mxu0 %v2447_v56 }
 0x4f2   :  { %2461 = vmatprep.subr.msk.bf16.mxu0 %vm2916_vm5, %v2459_v45 }
 0x5ba   :  { %v2273_v58 = vpop.f32.mrb[2].mxu0 }
 0x5bb   :  { %408 = vst.msk [vmem:[#allocation2 + $0x8] sm:$0xff] %vm210_vm1, %v2273_v58  ;;  %v398_v59 = vpop.f32.mrb[3].mxu0 }
 0x5bc   :  { %407 = vst.msk [vmem:[#allocation2] sm:$0xff] %vm210_vm1, %v398_v59 }
 0x5bf   :  { %v2287_v60 = vpop.f32.mrb[4].mxu0 }
 0x5c0   :  { %v604_v61 = vpop.f32.mrb[5].mxu0 }
 0x5c1   :  { %615 = vrot.lane.b32.xlu1 %v604_v61, %s2768_s27 }
 0x5c5   :  { %617 = vrot.lane.b32.xlu1 %v2287_v60, %s2768_s27 }
 0x633   :  { %v616_v62 = vpop.permute.xlu1 %615 }
 0x634   :  { %622 = vst.msk [vmem:[#allocation2] sm:$0xff] %vm621_vm3, %v616_v62 }
 0x637   :  { %v618_v63 = vpop.permute.xlu1 %617 }
 0x638   :  { %623 = vst.msk [vmem:[#allocation2 + $0x8] sm:$0xff] %vm621_vm3, %v618_v63 }
 0x63b   :  { %v624_v0 = vld [vmem:[#allocation2] sm:$0xff] }
 0x63c   :  { %2296 = vmatprep.mubr.msk.f32.mxu0 %vm60_vm0, %v624_v0 }
 0x63f   :  { %v625_v1 = vld [vmem:[#allocation2 + $0x8] sm:$0xff] }
 0x640   :  { %2297 = vmatmul.mubr.msk.f32.vlgmr.msra.gmra.mrb[6].mxu0 %vm60_vm0, %v625_v1 }
 0x641   :  { %2464 = vmatpush3.bf16.xpose.msk.msra.mxu0 %vm2916_vm5, %v2459_v45 }
 0x642   :  { %2467 = vmatprep.subr.msk.bf16.mxu0 %vm2916_vm5, %v2465_v50 }
 0x649   :  { %2470 = vmatpush3.bf16.xpose.msk.msra.mxu0 %vm2916_vm5, %v2465_v50  ;;  %v2122_v50 = vld [vmem:[#allocation6 + $0x19] ss:$0 sm:$0xff] }
 0x713   :  { %v2298_v3 = vpop.f32.mrb[6].mxu0 }
 0x714   :  { %v709_v4 = vadd.f32 %v2298_v3, %v2106_v2  ;;  %v703_v5 = vpop.f32.mrb[7].mxu0 }
 0x715   :  { %v704_v6 = vadd.f32 %v2106_v2, %v703_v5 }
 0x716   :  { %v713_v7 = vadd.f32 %v709_v4, %v2844_v35 }
 0x717   :  { %v712_v8 = vadd.f32 %v704_v6, %v2840_v33  ;;  %v110_v33 = vld [vmem:[#allocation8 + $0x10] sm:$0xff] }
 0x718   :  { %v719_v9 = vsel %vm60_vm0, %v713_v7, 0.0  ;;  %v2451_v21 = vpack.c.bf16 %v111_v20, %v110_v33 }
 0x719   :  { %720 = vadd.xlane.f32.xlu1 %v719_v9  ;;  %v716_v10 = vsel %vm60_vm0, %v712_v8, 0.0 }
 0x71a   :  { %717 = vadd.xlane.f32.xlu0 %v716_v10  ;;  %2452 = vmatprep.subr.bf16.mxu1 %v2451_v21 }
 0x71b   :  { %2454 = vmatpush3.bf16.msra.mxu1 %v2451_v21 }
 0x71c   :  { %2456 = vmatprep.subr.bf16.mxu1 %v2455_v24 }
 0x71f   :  { %2458 = vmatpush3.bf16.msra.mxu1 %v2455_v24 }
 0x7a6   :  { %v721_v11 = vpop.xlane.xlu1 %720 }
 0x7a7   :  { %v723_v12 = vmul.f32 0.03125, %v721_v11  ;;  %v718_v13 = vpop.xlane.xlu0 %717 }
 0x7a8   :  { %v722_v14 = vmul.f32 0.03125, %v718_v13 }
 0x7a9   :  { %v725_v15 = vsub.f32 %v713_v7, %v723_v12  ;;  %v2114_v12 = vld [vmem:[#allocation6 + $0x17] ss:$0 sm:$0xff] }
 0x7aa   :  { %v724_v16 = vsub.f32 %v712_v8, %v722_v14 }
 0x7ab   :  { %v727_v19 = vmul.f32 %v725_v15, %v725_v15 }
 0x7ac   :  { %v726_v17 = vmul.f32 %v724_v16, %v724_v16 }
 0x7ad   :  { %v731_v35 = vsel %vm60_vm0, %v727_v19, 0.0 }
 0x7ae   :  { %v728_v18 = vsel %vm60_vm0, %v726_v17, 0.0 }
 0x7af   :  { %729 = vadd.xlane.f32.xlu0 %v728_v18 }
 0x7b3   :  { %732 = vadd.xlane.f32.xlu0 %v731_v35 }
 0x83c   :  { %v730_v25 = vpop.xlane.xlu0 %729 }
 0x83d   :  { %v734_v26 = vmul.f32 0.03125, %v730_v25 }
 0x83f   :  { %v736_v27 = vadd.f32 1e-12, %v734_v26 }
 0x840   :  { %v733_v28 = vpop.xlane.xlu0 %732 }
 0x841   :  { %2616 = vrsqrt.f32 %v736_v27  ;;  %v735_v29 = vmul.f32 0.03125, %v733_v28 }
 0x843   :  { %v737_v30 = vadd.f32 1e-12, %v735_v29  ;;  %v1000_v29 = vld [vmem:[#allocation8 + $0x80] sm:$0xff] }
 0x845   :  { %2618 = vrsqrt.f32 %v737_v30  ;;  %v1001_v30 = vld [vmem:[#allocation8 + $0xa0] sm:$0xff] }
 0x84b   :  { %v2617_v31 = vpop.eup %2616 }
 0x84c   :  { %v740_v34 = vmul.f32 %v2617_v31, %v724_v16  ;;  %v2471_v31 = vpack.c.bf16 %v1001_v30, %v1000_v29 }
 0x84e   :  { %v746_v37 = vmul.f32 %v2109_v32, %v740_v34  ;;  %2472 = vmatprep.subr.bf16.mxu1 %v2471_v31  ;;  %v1003_v34 = vld [vmem:[#allocation8 + $0xe0] sm:$0xff] }
 0x84f   :  { %v2619_v38 = vpop.eup %2618 }
 0x850   :  { %v741_v39 = vmul.f32 %v2619_v38, %v725_v15  ;;  %v752_v40 = vadd.f32 %v2110_v36, %v746_v37 }
 0x852   :  { %v747_v42 = vmul.f32 %v2109_v32, %v741_v39  ;;  %2307 = vmatprep.mubr.msk.f32.mxu1 %vm60_vm0, %v752_v40  ;;  %v1002_v32 = vld [vmem:[#allocation8 + $0xc0] sm:$0xff] }
 0x854   :  { %v753_v41 = vadd.f32 %v2110_v36, %v747_v42  ;;  %v2475_v36 = vpack.c.bf16 %v1003_v34, %v1002_v32 }
 0x856   :  { %2308 = vmatmul.mubr.msk.f32.vlgmr.msra.gmra.mrb[4].mxu1 %vm60_vm0, %v753_v41 }
 0x857   :  { %2474 = vmatpush3.bf16.msra.mxu1 %v2471_v31 }
 0x858   :  { %2476 = vmatprep.subr.bf16.mxu1 %v2475_v36 }
 0x85b   :  { %2478 = vmatpush3.bf16.msra.mxu1 %v2475_v36 }
 0x929   :  { %v2309_v52 = vpop.f32.mrb[4].mxu1 }
 0x92a   :  { %v837_v53 = vadd.f32 %v2309_v52, %v2111_v51  ;;  %v831_v55 = vpop.f32.mrb[5].mxu1 }
 0x92b   :  { %v832_v56 = vadd.f32 %v2111_v51, %v831_v55 }
 0x92c   :  { %v843_v58 = vmul.f32 0.044715, %v837_v53  ;;  %v841_v9 = vmul.f32 0.5, %v837_v53 }
 0x92d   :  { %v842_v59 = vmul.f32 0.044715, %v832_v56  ;;  %v840_v7 = vmul.f32 0.5, %v832_v56 }
 0x92e   :  { %v845_v60 = vmul.f32 %v843_v58, %v837_v53 }
 0x92f   :  { %v844_v61 = vmul.f32 %v842_v59, %v832_v56 }
 0x930   :  { %v847_v62 = vmul.f32 %v845_v60, %v837_v53 }
 0x931   :  { %v846_v63 = vmul.f32 %v844_v61, %v832_v56 }
 0x932   :  { %v849_v0 = vadd.f32 %v847_v62, %v837_v53 }
 0x933   :  { %v848_v1 = vadd.f32 %v846_v63, %v832_v56  ;;  %v2123_v56 = vld [vmem:[#allocation6 + $0x1a] ss:$0 sm:$0xff] }
 0x934   :  { %v851_v2 = vmul.f32 0.7978846, %v849_v0 }
 0x935   :  { %v850_v3 = vmul.f32 0.7978846, %v848_v1 }
 0x936   :  { %2620 = vtanh.f32 %v851_v2 }
 0x937   :  { %2622 = vtanh.f32 %v850_v3 }
 0x940   :  { %v2621_v4 = vpop.eup %2620 }
 0x941   :  { %v2623_v5 = vpop.eup %2622  ;;  %v855_v6 = vadd.f32 1.0, %v2621_v4 }
 0x942   :  { %v854_v8 = vadd.f32 1.0, %v2623_v5 }
 0x943   :  { %v857_v11 = vmul.f32 %v855_v6, %v841_v9 }
 0x944   :  { %v856_v10 = vmul.f32 %v854_v8, %v840_v7 }
 0x946   :  { %2318 = vmatprep.mubr.msk.f32.mxu0 %vm863_vm4, %v856_v10 }
 0x947   :  { %2319 = vmatmul.mubr.msk.f32.vlgmr.msra.gmra.mrb[8].mxu0 %vm863_vm4, %v857_v11 }
 0xa1a   :  { %v2320_v13 = vpop.f32.mrb[8].mxu0 }
 0xa1b   :  { %v954_v14 = vadd.f32 %v2320_v13, %v2114_v12  ;;  %v948_v15 = vpop.f32.mrb[9].mxu0 }
 0xa1c   :  { %v949_v16 = vadd.f32 %v2114_v12, %v948_v15 }
 0xa1d   :  { %v958_v17 = vadd.f32 %v954_v14, %v753_v41 }
 0xa1e   :  { %v957_v18 = vadd.f32 %v949_v16, %v752_v40 }
 0xa1f   :  { %v964_v19 = vsel %vm60_vm0, %v958_v17, 0.0 }
 0xa20   :  { %965 = vadd.xlane.f32.xlu1 %v964_v19  ;;  %v961_v35 = vsel %vm60_vm0, %v957_v18, 0.0 }
 0xa21   :  { %962 = vadd.xlane.f32.xlu0 %v961_v35 }
 0xaad   :  { %v966_v33 = vpop.xlane.xlu1 %965 }
 0xaae   :  { %v968_v20 = vmul.f32 0.03125, %v966_v33  ;;  %v963_v21 = vpop.xlane.xlu0 %962 }
 0xaaf   :  { %v967_v22 = vmul.f32 0.03125, %v963_v21 }
 0xab0   :  { %v970_v23 = vsub.f32 %v958_v17, %v968_v20 }
 0xab1   :  { %v969_v24 = vsub.f32 %v957_v18, %v967_v22 }
 0xab2   :  { %v972_v25 = vmul.f32 %v970_v23, %v970_v23 }
 0xab3   :  { %v971_v26 = vmul.f32 %v969_v24, %v969_v24 }
 0xab4   :  { %v976_v27 = vsel %vm60_vm0, %v972_v25, 0.0 }
 0xab5   :  { %977 = vadd.xlane.f32.xlu1 %v976_v27  ;;  %v973_v28 = vsel %vm60_vm0, %v971_v26, 0.0 }
 0xab6   :  { %974 = vadd.xlane.f32.xlu0 %v973_v28 }
 0xb42   :  { %v978_v37 = vpop.xlane.xlu1 %977 }
 0xb43   :  { %v980_v38 = vmul.f32 0.03125, %v978_v37  ;;  %v975_v39 = vpop.xlane.xlu0 %974 }
 0xb44   :  { %v979_v40 = vmul.f32 0.03125, %v975_v39 }
 0xb45   :  { %v982_v42 = vadd.f32 1e-12, %v980_v38 }
 0xb46   :  { %v981_v41 = vadd.f32 1e-12, %v979_v40 }
 0xb47   :  { %2624 = vrsqrt.f32 %v982_v42 }
 0xb48   :  { %2626 = vrsqrt.f32 %v981_v41 }
 0xb51   :  { %v2625_v43 = vpop.eup %2624 }
 0xb52   :  { %v2627_v45 = vpop.eup %2626  ;;  %v986_v47 = vmul.f32 %v2625_v43, %v970_v23 }
 0xb53   :  { %v985_v49 = vmul.f32 %v2627_v45, %v969_v24 }
 0xb54   :  { %v992_v51 = vmul.f32 %v2121_v44, %v986_v47 }
 0xb55   :  { %v991_v52 = vmul.f32 %v2121_v44, %v985_v49 }
 0xb56   :  { %v2936_v55 = vadd.f32 %v2122_v50, %v992_v51 }
 0xb57   :  { %v2934_v53 = vadd.f32 %v2122_v50, %v991_v52 }
 0xb59   :  { %2329 = vmatprep.mubr.msk.f32.mxu1 %vm60_vm0, %v2934_v53 }
 0xb5a   :  { %2330 = vmatmul.mubr.msk.f32.vlgmr.msra.gmra.mrb[6].mxu1 %vm60_vm0, %v2936_v55 }
 0xc2d   :  { %v2331_v58 = vpop.f32.mrb[6].mxu1 }
 0xc2e   :  { %v1099_v59 = vadd.f32 %v2331_v58, %v2123_v56  ;;  %v1093_v60 = vpop.f32.mrb[7].mxu1 }
 0xc2f   :  { %v1094_v61 = vadd.f32 %v2123_v56, %v1093_v60 }
 0xc31   :  { %2336 = vmatprep.mubr.msk.f32.mxu1 %vm210_vm1, %v1094_v61  ;;  %v2943_v62 = vpack.i.bf16 %v1099_v59, %v1094_v61 }
 0xc33   :  { %2582 = vrot.lane.b32.xlu1 %v2943_v62, %s2763_s2  ;;  %2577 = vrot.lane.b32.xlu0 %v2943_v62, %s2764_s23 }
 0xc37   :  { %1306 = vrot.lane.b32.xlu1 %v1094_v61, %s2765_s24 }
 0xc3b   :  { %1308 = vrot.lane.b32.xlu1 %v1099_v59, %s2765_s24 }
 0xca5   :  { %v2583_v63 = vpop.permute.xlu1 %2582  ;;  %v2578_v0 = vpop.permute.xlu0 %2577 }
 0xca6   :  { %v2585_v1 = vunpack.i.h.bf16 %v2583_v63  ;;  %v2584_v2 = vunpack.i.l.bf16 %v2583_v63  ;;  %v2580_v3 = vunpack.i.h.bf16 %v2578_v0  ;;  %v2579_v4 = vunpack.i.l.bf16 %v2578_v0 }
 0xca8   :  { %v2479_v5 = vpack.c.bf16 %v2580_v3, %v2579_v4  ;;  %v2489_v6 = vpack.c.bf16 %v2585_v1, %v2584_v2  ;;  %v1004_v4 = vld [vmem:[#allocation8 + $0x88] sm:$0xff] }
 0xca9   :  { %v1307_v7 = vpop.permute.xlu1 %1306 }
 0xcaa   :  { %2481 = vmatprep.subr.msk.bf16.mxu1 %vm2859_vm2, %v2479_v5 }
 0xcab   :  { %2484 = vmatpush3.bf16.xpose.msk.msra.mxu1 %vm2859_vm2, %v2479_v5  ;;  %v1005_v5 = vld [vmem:[#allocation8 + $0xa8] sm:$0xff] }
 0xcac   :  { %2491 = vmatprep.subr.msk.bf16.mxu1 %vm2859_vm2, %v2489_v6 }
 0xcad   :  { %v1309_v8 = vpop.permute.xlu1 %1308 }
 0xcb2   :  { %2337 = vmatmul.mubr.msk.f32.vlgmr.msra.gmra.mrb[8].mxu1 %vm210_vm1, %v1099_v59 }
 0xcb3   :  { %2494 = vmatpush3.bf16.xpose.msk.msra.mxu1 %vm2859_vm2, %v2489_v6  ;;  %2350 = vmatprep.mubr.msk.f32.mxu1 %vm210_vm1, %v1307_v7  ;;  %v2499_v6 = vpack.c.bf16 %v1005_v5, %v1004_v4  ;;  %v1006_v7 = vld [vmem:[#allocation8 + $0xc8] sm:$0xff] }
 0xcba   :  { %2351 = vmatmul.mubr.msk.f32.vlgmr.msra.gmra.mrb[10].mxu1 %vm210_vm1, %v1309_v8  ;;  %v1007_v8 = vld [vmem:[#allocation8 + $0xe8] sm:$0xff] }
 0xd85   :  { %v2338_v9 = vpop.f32.mrb[8].mxu1 }
 0xd86   :  { %v1192_v10 = vmul.f32 0.25, %v2338_v9  ;;  %v1182_v11 = vpop.f32.mrb[9].mxu1  ;;  %v2503_v9 = vpack.c.bf16 %v1007_v8, %v1006_v7 }
 0xd87   :  { %v1191_v12 = vmul.f32 0.25, %v1182_v11 }
 0xd88   :  { %v1194_v13 = vadd.f32 %v1192_v10, %v2874_v54 }
 0xd89   :  { %v1193_v14 = vadd.f32 %v1191_v12, %v2876_v57 }
 0xd8a   :  { %v1198_v15 = vsel %vm210_vm1, %v1194_v13, -inf }
 0xd8b   :  { %1199 = vmax.xlane.f32.xlu1 %v1198_v15  ;;  %v1195_v16 = vsel %vm210_vm1, %v1193_v14, -inf }
 0xd8c   :  { %1196 = vmax.xlane.f32.xlu0 %v1195_v16 }
 0xd8d   :  { %v2352_v48 = vpop.f32.mrb[10].mxu1 }
 0xd8e   :  { %v1388_v17 = vpop.f32.mrb[11].mxu1  ;;  %v1398_v18 = vmul.f32 0.25, %v2352_v48 }
 0xd8f   :  { %v1397_v19 = vmul.f32 0.25, %v1388_v17  ;;  %v2138_v17 = vld [vmem:[#allocation6 + $0x1b] ss:$0 sm:$0xff] }
 0xd90   :  { %v1400_v20 = vadd.f32 %v1398_v18, %v2874_v54 }
 0xd91   :  { %v1399_v35 = vadd.f32 %v1397_v19, %v2876_v57 }
 0xd92   :  { %v1404_v21 = vsel %vm210_vm1, %v1400_v20, -inf }
 0xd93   :  { %v1401_v33 = vsel %vm210_vm1, %v1399_v35, -inf }
 0xd94   :  { %1402 = vmax.xlane.f32.xlu0 %v1401_v33 }
 0xd98   :  { %1405 = vmax.xlane.f32.xlu0 %v1404_v21 }
 0xe18   :  { %v1200_v22 = vpop.xlane.xlu1 %1199 }
 0xe19   :  { %v1202_v23 = vsub.f32 %v1194_v13, %v1200_v22  ;;  %v1197_v24 = vpop.xlane.xlu0 %1196 }
 0xe1a   :  { %v1201_v25 = vsub.f32 %v1193_v14, %v1197_v24 }
 0xe1b   :  { %v1205_v26 = vmul.f32 1.442695, %v1202_v23 }
 0xe1c   :  { %v1203_v27 = vmul.f32 1.442695, %v1201_v25 }
 0xe1d   :  { %2628 = vpow2.f32 %v1205_v26 }
 0xe1e   :  { %2630 = vpow2.f32 %v1203_v27 }
 0xe21   :  { %v1403_v28 = vpop.xlane.xlu0 %1402 }
 0xe22   :  { %v1407_v29 = vsub.f32 %v1399_v35, %v1403_v28 }
 0xe24   :  { %v1409_v30 = vmul.f32 1.442695, %v1407_v29 }
 0xe25   :  { %v1406_v57 = vpop.xlane.xlu0 %1405 }
 0xe26   :  { %2632 = vpow2.f32 %v1409_v30  ;;  %v1408_v31 = vsub.f32 %v1400_v20, %v1406_v57 }
 0xe27   :  { %v2629_v32 = vpop.eup %2628 }
 0xe28   :  { %v2631_v54 = vpop.eup %2630  ;;  %v1411_v34 = vmul.f32 1.442695, %v1408_v31  ;;  %v1210_v36 = vsel %vm210_vm1, %v2629_v32, 0.0 }
 0xe29   :  { %1211 = vadd.xlane.f32.xlu1 %v1210_v36  ;;  %v1207_v37 = vsel %vm210_vm1, %v2631_v54, 0.0  ;;  %v1011_v36 = vld [vmem:[#allocation8 + $0xf0] sm:$0xff] }
 0xe2a   :  { %2634 = vpow2.f32 %v1411_v34  ;;  %1208 = vadd.xlane.f32.xlu0 %v1207_v37  ;;  %v1010_v34 = vld [vmem:[#allocation8 + $0xd0] sm:$0xff] }
 0xe2b   :  { %v2511_v37 = vpack.c.bf16 %v1011_v36, %v1010_v34 }
 0xe30   :  { %v2633_v38 = vpop.eup %2632 }
 0xe31   :  { %v1413_v39 = vsel %vm210_vm1, %v2633_v38, 0.0 }
 0xe32   :  { %1414 = vadd.xlane.f32.xlu0 %v1413_v39 }
 0xe34   :  { %v2635_v40 = vpop.eup %2634 }
 0xe35   :  { %v1416_v42 = vsel %vm210_vm1, %v2635_v40, 0.0 }
 0xe36   :  { %1417 = vadd.xlane.f32.xlu1 %v1416_v42 }
 0xe47   :  { %2592 = vrot.lane.b32.xlu1 %v2943_v62, %s2766_s25 }
 0xe48   :  { %2587 = vrot.lane.b32.xlu0 %v2943_v62, %s2767_s26 }
 0xeb6   :  { %v1212_v43 = vpop.xlane.xlu1 %1211 }
 0xeb7   :  { %v1209_v41 = vpop.xlane.xlu0 %1208 }
 0xeb8   :  { %2636 = vrcp.f32 %v1209_v41 }
 0xeb9   :  { %2638 = vrcp.f32 %v1212_v43 }
 0xebf   :  { %v1415_v44 = vpop.xlane.xlu0 %1414 }
 0xec0   :  { %2640 = vrcp.f32 %v1415_v44 }
 0xec2   :  { %v2637_v45 = vpop.eup %2636 }
 0xec3   :  { %v1418_v47 = vpop.xlane.xlu1 %1417  ;;  %v2588_v49 = vpop.permute.xlu0 %2587  ;;  %v1215_v50 = vmul.f32 %v2637_v45, %v2631_v54  ;;  %v2141_v45 = vld [vmem:[#allocation6 + $0x1c] ss:$0 sm:$0xff] }
 0xec4   :  { %2642 = vrcp.f32 %v1418_v47  ;;  %v2590_v51 = vunpack.i.h.bf16 %v2588_v49  ;;  %v2589_v52 = vunpack.i.l.bf16 %v2588_v49  ;;  %v2639_v58 = vpop.eup %2638  ;;  %v2142_v49 = vld [vmem:[#allocation6 + $0x1d] ss:$0 sm:$0xff] }
 0xec5   :  { %2343 = vmatprep.mubr.msk.f32.mxu0 %vm210_vm1, %v1215_v50  ;;  %v1216_v63 = vmul.f32 %v2639_v58, %v2629_v32  ;;  %v1009_v32 = vld [vmem:[#allocation8 + $0xb0] sm:$0xff] }
 0xec6   :  { %v2485_v56 = vpack.c.bf16 %v2590_v51, %v2589_v52 }
 0xec7   :  { %v2593_v59 = vpop.permute.xlu1 %2592 }
 0xec8   :  { %v2595_v60 = vunpack.i.h.bf16 %v2593_v59  ;;  %v2594_v61 = vunpack.i.l.bf16 %v2593_v59  ;;  %2486 = vmatprep.subr.bf16.mxu0 %v2485_v56 }
 0xec9   :  { %2488 = vmatpush3.bf16.msra.mxu0 %v2485_v56 }
 0xeca   :  { %v2641_v62 = vpop.eup %2640  ;;  %v2495_v0 = vpack.c.bf16 %v2595_v60, %v2594_v61  ;;  %v1012_v60 = vld [vmem:[#allocation8 + $0x98] sm:$0xff] }
 0xecb   :  { %v1421_v1 = vmul.f32 %v2641_v62, %v2633_v38  ;;  %v1013_v61 = vld [vmem:[#allocation8 + $0xb8] sm:$0xff] }
 0xecc   :  { %2344 = vmatmul.mubr.msk.f32.vlgmr.msra.gmra.mrb[10].mxu0 %vm210_vm1, %v1216_v63  ;;  %2496 = vmatprep.subr.bf16.mxu0 %v2495_v0  ;;  %v2515_v62 = vpack.c.bf16 %v1013_v61, %v1012_v60  ;;  %v1014_v63 = vld [vmem:[#allocation8 + $0xd8] sm:$0xff] }
 0xecd   :  { %2498 = vmatpush3.bf16.msra.mxu0 %v2495_v0  ;;  %2357 = vmatprep.mubr.msk.f32.mxu0 %vm210_vm1, %v1421_v1  ;;  %v1015_v0 = vld [vmem:[#allocation8 + $0xf8] sm:$0xff] }
 0xece   :  { %v2643_v2 = vpop.eup %2642  ;;  %2500 = vmatprep.subr.bf16.mxu0 %v2499_v6  ;;  %v2521_v1 = vpack.c.bf16 %v1015_v0, %v1014_v63  ;;  %v2154_v63 = vld [vmem:[#allocation6 + $0x21] ss:$0 sm:$0xff] }
 0xecf   :  { %v1422_v3 = vmul.f32 %v2643_v2, %v2635_v40  ;;  %v2143_v2 = vld [vmem:[#allocation6 + $0x1e] ss:$0 sm:$0xff] }
 0xed1   :  { %2358 = vmatmul.mubr.msk.f32.vlgmr.msra.gmra.mrb[12].mxu0 %vm210_vm1, %v1422_v3 }
 0xed2   :  { %2502 = vmatpush3.bf16.msra.mxu0 %v2499_v6 }
 0xed3   :  { %2504 = vmatprep.subr.bf16.mxu0 %v2503_v9 }
 0xed6   :  { %2506 = vmatpush3.bf16.msra.mxu0 %v2503_v9 }
 0xed7   :  { %2517 = vmatprep.subr.msk.bf16.mxu0 %vm2916_vm5, %v2515_v62 }
 0xf9f   :  { %v2345_v10 = vpop.f32.mrb[10].mxu0 }
 0xfa0   :  { %1305 = vst.msk [vmem:[#allocation2 + $0x8] sm:$0xff] %vm210_vm1, %v2345_v10  ;;  %v1295_v11 = vpop.f32.mrb[11].mxu0 }
 0xfa1   :  { %1304 = vst.msk [vmem:[#allocation2] sm:$0xff] %vm210_vm1, %v1295_v11 }
 0xfa4   :  { %v2359_v12 = vpop.f32.mrb[12].mxu0 }
 0xfa5   :  { %v1501_v13 = vpop.f32.mrb[13].mxu0 }
 0xfa6   :  { %1512 = vrot.lane.b32.xlu1 %v1501_v13, %s2768_s27 }
 0xfaa   :  { %1514 = vrot.lane.b32.xlu1 %v2359_v12, %s2768_s27 }
0x1018   :  { %v1513_v14 = vpop.permute.xlu1 %1512 }
0x1019   :  { %1518 = vst.msk [vmem:[#allocation2] sm:$0xff] %vm621_vm3, %v1513_v14 }
0x101c   :  { %v1515_v15 = vpop.permute.xlu1 %1514 }
0x101d   :  { %1519 = vst.msk [vmem:[#allocation2 + $0x8] sm:$0xff] %vm621_vm3, %v1515_v15 }
0x1020   :  { %v1520_v16 = vld [vmem:[#allocation2] sm:$0xff] }
0x1021   :  { %2368 = vmatprep.mubr.msk.f32.mxu0 %vm60_vm0, %v1520_v16 }
0x1024   :  { %v1521_v48 = vld [vmem:[#allocation2 + $0x8] sm:$0xff] }
0x1025   :  { %2369 = vmatmul.mubr.msk.f32.vlgmr.msra.gmra.mrb[14].mxu0 %vm60_vm0, %v1521_v48 }
0x1026   :  { %2520 = vmatpush3.bf16.xpose.msk.msra.mxu0 %vm2916_vm5, %v2515_v62 }
0x1027   :  { %2523 = vmatprep.subr.msk.bf16.mxu0 %vm2916_vm5, %v2521_v1 }
0x102e   :  { %2526 = vmatpush3.bf16.xpose.msk.msra.mxu0 %vm2916_vm5, %v2521_v1 }
0x10f8   :  { %v2370_v18 = vpop.f32.mrb[14].mxu0 }
0x10f9   :  { %v1605_v19 = vadd.f32 %v2370_v18, %v2138_v17  ;;  %v1599_v35 = vpop.f32.mrb[15].mxu0 }
0x10fa   :  { %v1600_v33 = vadd.f32 %v2138_v17, %v1599_v35 }
0x10fb   :  { %v1609_v20 = vadd.f32 %v1605_v19, %v2936_v55 }
0x10fc   :  { %v1608_v21 = vadd.f32 %v1600_v33, %v2934_v53  ;;  %v1008_v53 = vld [vmem:[#allocation8 + $0x90] sm:$0xff] }
0x10fd   :  { %v1615_v22 = vsel %vm60_vm0, %v1609_v20, 0.0  ;;  %v2507_v54 = vpack.c.bf16 %v1009_v32, %v1008_v53 }
0x10fe   :  { %1616 = vadd.xlane.f32.xlu1 %v1615_v22  ;;  %v1612_v23 = vsel %vm60_vm0, %v1608_v21, 0.0 }
0x10ff   :  { %1613 = vadd.xlane.f32.xlu0 %v1612_v23  ;;  %2508 = vmatprep.subr.bf16.mxu1 %v2507_v54 }
0x1100   :  { %2510 = vmatpush3.bf16.msra.mxu1 %v2507_v54 }
0x1101   :  { %2512 = vmatprep.subr.bf16.mxu1 %v2511_v37 }
0x1104   :  { %2514 = vmatpush3.bf16.msra.mxu1 %v2511_v37 }
0x118b   :  { %v1617_v24 = vpop.xlane.xlu1 %1616 }
0x118c   :  { %v1619_v25 = vmul.f32 0.03125, %v1617_v24  ;;  %v1614_v26 = vpop.xlane.xlu0 %1613 }
0x118d   :  { %v1618_v27 = vmul.f32 0.03125, %v1614_v26 }
0x118e   :  { %v1621_v28 = vsub.f32 %v1609_v20, %v1619_v25 }
0x118f   :  { %v1620_v29 = vsub.f32 %v1608_v21, %v1618_v27  ;;  %v2146_v21 = vld [vmem:[#allocation6 + $0x1f] ss:$0 sm:$0xff] }
0x1190   :  { %v1623_v31 = vmul.f32 %v1621_v28, %v1621_v28 }
0x1191   :  { %v1622_v30 = vmul.f32 %v1620_v29, %v1620_v29 }
0x1192   :  { %v1627_v55 = vsel %vm60_vm0, %v1623_v31, 0.0 }
0x1193   :  { %v1624_v57 = vsel %vm60_vm0, %v1622_v30, 0.0 }
0x1194   :  { %1625 = vadd.xlane.f32.xlu0 %v1624_v57 }
0x1198   :  { %1628 = vadd.xlane.f32.xlu0 %v1627_v55 }
0x1221   :  { %v1626_v38 = vpop.xlane.xlu0 %1625 }
0x1222   :  { %v1630_v39 = vmul.f32 0.03125, %v1626_v38  ;;  %v1895_v38 = vld [vmem:[#allocation8 + $0x100] sm:$0xff] }
0x1224   :  { %v1632_v40 = vadd.f32 1e-12, %v1630_v39  ;;  %v1896_v39 = vld [vmem:[#allocation8 + $0x120] sm:$0xff] }
0x1225   :  { %v1629_v42 = vpop.xlane.xlu0 %1628 }
0x1226   :  { %2644 = vrsqrt.f32 %v1632_v40  ;;  %v1631_v41 = vmul.f32 0.03125, %v1629_v42  ;;  %v2528_v40 = vpack.c.bf16 %v1896_v39, %v1895_v38  ;;  %v2769_v42 = vmov 0.0|0.0  }
0x1227   :  { %2527 = vmatprep.subr.bf16.mxu1 %v2769_v42 }
0x1228   :  { %v1633_v43 = vadd.f32 1e-12, %v1631_v41  ;;  %v1897_v41 = vld [vmem:[#allocation8 + $0x140] sm:$0xff] }
0x122a   :  { %2646 = vrsqrt.f32 %v1633_v43  ;;  %v1898_v43 = vld [vmem:[#allocation8 + $0x160] sm:$0xff] }
0x1230   :  { %v2645_v44 = vpop.eup %2644 }
0x1231   :  { %v1636_v47 = vmul.f32 %v2645_v44, %v1620_v29  ;;  %v2531_v44 = vpack.c.bf16 %v1898_v43, %v1897_v41 }
0x1233   :  { %v1642_v50 = vmul.f32 %v2141_v45, %v1636_v47 }
0x1234   :  { %v2647_v51 = vpop.eup %2646 }
0x1235   :  { %v1637_v52 = vmul.f32 %v2647_v51, %v1621_v28  ;;  %v1648_v56 = vadd.f32 %v2142_v49, %v1642_v50 }
0x1237   :  { %v1643_v58 = vmul.f32 %v2141_v45, %v1637_v52  ;;  %2379 = vmatprep.mubr.msk.f32.mxu1 %vm60_vm0, %v1648_v56  ;;  %v2771_v45 = vmov 0.0  }
0x1239   :  { %v1649_v59 = vadd.f32 %v2142_v49, %v1643_v58 }
0x123b   :  { %2380 = vmatmul.mubr.msk.f32.vlgmr.msra.gmra.mrb[12].mxu1 %vm60_vm0, %v1649_v59 }
0x123c   :  { %2529 = vmatpush3.bf16.msra.mxu1 %v2528_v40  ;;  %2401 = vmatprep.mubr.msk.f32.mxu1 %vm2770_vm6, %v2771_v45 }
0x123d   :  { %2530 = vmatprep.subr.bf16.mxu1 %v2769_v42 }
0x1240   :  { %2532 = vmatpush3.bf16.msra.mxu1 %v2531_v44 }
0x1241   :  { %2533 = vmatprep.subr.bf16.mxu1 %v2769_v42 }
0x130e   :  { %v2381_v3 = vpop.f32.mrb[12].mxu1 }
0x130f   :  { %v1733_v4 = vadd.f32 %v2381_v3, %v2143_v2  ;;  %v1727_v5 = vpop.f32.mrb[13].mxu1 }
0x1310   :  { %v1728_v6 = vadd.f32 %v2143_v2, %v1727_v5 }
0x1311   :  { %v1739_v7 = vmul.f32 0.044715, %v1733_v4  ;;  %v1737_v35 = vmul.f32 0.5, %v1733_v4 }
0x1312   :  { %v1738_v8 = vmul.f32 0.044715, %v1728_v6  ;;  %v1736_v18 = vmul.f32 0.5, %v1728_v6 }
0x1313   :  { %v1741_v9 = vmul.f32 %v1739_v7, %v1733_v4  ;;  %v1900_v7 = vld [vmem:[#allocation8 + $0x128] sm:$0xff] }
0x1314   :  { %v1740_v10 = vmul.f32 %v1738_v8, %v1728_v6  ;;  %v1901_v8 = vld [vmem:[#allocation8 + $0x148] sm:$0xff] }
0x1315   :  { %v1743_v11 = vmul.f32 %v1741_v9, %v1733_v4 }
0x1316   :  { %v1742_v12 = vmul.f32 %v1740_v10, %v1728_v6  ;;  %v1902_v10 = vld [vmem:[#allocation8 + $0x168] sm:$0xff] }
0x1317   :  { %v1745_v13 = vadd.f32 %v1743_v11, %v1733_v4  ;;  %v2537_v11 = vpack.c.bf16 %v1902_v10, %v1901_v8 }
0x1318   :  { %v1744_v14 = vadd.f32 %v1742_v12, %v1728_v6  ;;  %v1899_v6 = vld [vmem:[#allocation8 + $0x108] sm:$0xff]  ;;  %v2155_v12 = vld [vmem:[#allocation6 + $0x22] ss:$0 sm:$0xff] }
0x1319   :  { %v1747_v15 = vmul.f32 0.7978846, %v1745_v13  ;;  %v2534_v9 = vpack.c.bf16 %v1900_v7, %v1899_v6 }
0x131a   :  { %v1746_v16 = vmul.f32 0.7978846, %v1744_v14 }
0x131b   :  { %2648 = vtanh.f32 %v1747_v15 }
0x131c   :  { %2650 = vtanh.f32 %v1746_v16 }
0x1325   :  { %v2649_v48 = vpop.eup %2648 }
0x1326   :  { %v2651_v46 = vpop.eup %2650  ;;  %v1751_v17 = vadd.f32 1.0, %v2649_v48  ;;  %v2157_v48 = vld [vmem:[#allocation6 + $0x23] ss:$0 sm:$0xff] }
0x1327   :  { %v1750_v19 = vadd.f32 1.0, %v2651_v46 }
0x1328   :  { %v1753_v20 = vmul.f32 %v1751_v17, %v1737_v35 }
0x1329   :  { %v1752_v33 = vmul.f32 %v1750_v19, %v1736_v18 }
0x132b   :  { %2390 = vmatprep.mubr.msk.f32.mxu0 %vm863_vm4, %v1752_v33 }
0x132c   :  { %2391 = vmatmul.mubr.msk.f32.vlgmr.msra.gmra.mrb[16].mxu0 %vm863_vm4, %v1753_v20 }
0x13ff   :  { %v2392_v22 = vpop.f32.mrb[16].mxu0 }
0x1400   :  { %v1849_v23 = vadd.f32 %v2392_v22, %v2146_v21  ;;  %v1843_v24 = vpop.f32.mrb[17].mxu0 }
0x1401   :  { %v1844_v25 = vadd.f32 %v2146_v21, %v1843_v24 }
0x1402   :  { %v1853_v26 = vadd.f32 %v1849_v23, %v1649_v59  ;;  %v2153_v59 = vld [vmem:[#allocation6 + $0x20] ss:$0 sm:$0xff] }
0x1403   :  { %v1852_v27 = vadd.f32 %v1844_v25, %v1648_v56 }
0x1404   :  { %v1859_v28 = vsel %vm60_vm0, %v1853_v26, 0.0 }
0x1405   :  { %1860 = vadd.xlane.f32.xlu0 %v1859_v28  ;;  %v1856_v29 = vsel %vm60_vm0, %v1852_v27, 0.0 }
0x1406   :  { %1857 = vadd.xlane.f32.xlu1 %v1856_v29 }
0x1492   :  { %v1861_v30 = vpop.xlane.xlu0 %1860 }
0x1493   :  { %v1863_v57 = vmul.f32 0.03125, %v1861_v30  ;;  %v1858_v31 = vpop.xlane.xlu1 %1857 }
0x1494   :  { %v1862_v55 = vmul.f32 0.03125, %v1858_v31 }
0x1495   :  { %v1865_v53 = vsub.f32 %v1853_v26, %v1863_v57 }
0x1496   :  { %v1864_v32 = vsub.f32 %v1852_v27, %v1862_v55 }
0x1497   :  { %v1867_v54 = vmul.f32 %v1865_v53, %v1865_v53 }
0x1498   :  { %v1866_v34 = vmul.f32 %v1864_v32, %v1864_v32 }
0x1499   :  { %v1871_v36 = vsel %vm60_vm0, %v1867_v54, 0.0 }
0x149a   :  { %1872 = vadd.xlane.f32.xlu0 %v1871_v36  ;;  %v1868_v37 = vsel %vm60_vm0, %v1866_v34, 0.0 }
0x149b   :  { %1869 = vadd.xlane.f32.xlu1 %v1868_v37 }
0x1527   :  { %v1873_v47 = vpop.xlane.xlu0 %1872 }
0x1528   :  { %v1875_v49 = vmul.f32 0.03125, %v1873_v47  ;;  %v1870_v50 = vpop.xlane.xlu1 %1869 }
0x1529   :  { %v1874_v51 = vmul.f32 0.03125, %v1870_v50 }
0x152a   :  { %v1877_v52 = vadd.f32 1e-12, %v1875_v49 }
0x152b   :  { %v1876_v56 = vadd.f32 1e-12, %v1874_v51 }
0x152c   :  { %2652 = vrsqrt.f32 %v1877_v52 }
0x152d   :  { %2654 = vrsqrt.f32 %v1876_v56 }
0x1536   :  { %v2653_v58 = vpop.eup %2652 }
0x1537   :  { %v2655_v60 = vpop.eup %2654  ;;  %v1881_v61 = vmul.f32 %v2653_v58, %v1865_v53 }
0x1538   :  { %v1880_v62 = vmul.f32 %v2655_v60, %v1864_v32 }
0x1539   :  { %v1887_v0 = vmul.f32 %v2153_v59, %v1881_v61 }
0x153a   :  { %v1886_v1 = vmul.f32 %v2153_v59, %v1880_v62 }
0x153b   :  { %v1893_v2 = vadd.f32 %v2154_v63, %v1887_v0 }
0x153c   :  { %v1892_v3 = vadd.f32 %v2154_v63, %v1886_v1 }
0x153d   :  { %v1904_v4 = vrot.slane %v1893_v2, 7 }
0x153f   :  { %v1907_v5 = vsel %vm1906_vm7, %v1892_v3, %v1904_v4 }
0x1540   :  { %2402 = vmatmul.mubr.msk.f32.vlgmr.msra.gmra.mrb[14].mxu1 %vm60_vm0, %v1907_v5 }
0x1541   :  { %2412 = vmatprep.mubr.msk.f32.mxu1 %vm2770_vm6, %v2771_v45  ;;  %2535 = vmatpush3.bf16.msra.mxu1 %v2534_v9 }
0x1542   :  { %2536 = vmatprep.subr.bf16.mxu1 %v2769_v42 }
0x1545   :  { %2538 = vmatpush3.bf16.msra.mxu1 %v2537_v11 }
0x1613   :  { %v1982_v13 = vpop.f32.mrb[14].mxu1 }
0x1614   :  { %v1983_v14 = vadd.f32 %v2155_v12, %v1982_v13  ;;  %v2403_v15 = vpop.f32.mrb[15].mxu1 }
0x1616   :  { %2656 = vtanh.f32 %v1983_v14 }
0x1620   :  { %v2657_v16 = vpop.eup %2656 }
0x1621   :  { %2413 = vmatmul.mubr.msk.f32.vlgmr.msra.gmra.mrb[16].mxu1 %vm60_vm0, %v2657_v16 }
0x16f4   :  { %v2061_v46 = vpop.f32.mrb[16].mxu1 }
0x16f5   :  { %v2062_v17 = vadd.f32 %v2157_v48, %v2061_v46  ;;  %v2414_v18 = vpop.f32.mrb[17].mxu1 }
0x16f7   :  { %v2065_v19 = vsub.f32 0.0, %v2062_v17 }
0x16f9   :  { %v2066_v35 = vmul.f32 1.442695, %v2065_v19 }
0x16fb   :  { %2658 = vpow2.f32 %v2066_v35 }
0x1705   :  { %v2659_v33 = vpop.eup %2658 }
0x1706   :  { %v2068_v20 = vadd.f32 1.0, %v2659_v33 }
0x1708   :  { %2660 = vrcp.f32 %v2068_v20 }
0x1712   :  { %v2661_v21 = vpop.eup %2660 }
0x1713   :  { %2072 = vst.msk [vmem:[#allocation9] sm:$0x3] %vm2071_vm8, %v2661_v21 }
0x1714   :  { %2739 = shalt.err (!%p2736_p0)
}
0x1715   :  { %s2740_s6 = scalar_lea.hbm %s3031_s3, 32 }
0x1716   :  { %p2741_p1 = scmp.ne.s32.totalorder %s3031_s3, %s2740_s6  ;;  %p2744_p2 = scmp.lt.u32.totalorder %s2740_s6, %s3031_s3 }
0x1718   :  { %p2746_p3 = pnand %p2744_p2, %p2741_p1 }
0x171a   :  { %2749 = shalt.err (!%p2746_p3)
}
0x171b   :  { %2082 = dma.vmem_to_hbm [thread:$0]  %s2080_s29, 32, %s3031_s3, [#allocation5]  }
0x171c   :  { %2754 = dma.done.wait [#allocation5], 32  }
0x171d   :  { %2755 = vsyncadd [#allocation5], 4294967264 }
0x171e   :  { %2086 = vsyncpa [#allocation4], 1 }
0x171f   :  { %2087 = vsyncpa [#allocation7], 1 }
0x1720   :  { %2088 = vsyncpa [#allocation5], 1 }

</bundles_post_ra>
